<compile_context>
chip_gen: v7x
topology: tpu7x:2x2x1
jax: 0.10.0
libtpu: 0.0.40
codegen_flags: <defaults>
</compile_context>

<pallas_src>
import functools

import jax
import jax.numpy as jnp
from jax.experimental import pallas as pl
from jax.experimental.pallas import tpu as pltpu


def gcn_block_kernel(x_ref, a_ref, w_ref, bgb_ref, s_ref, wout_ref, out_ref,
                     xres_ref, *, num_layers, t_tile, inv_h, eps):
    """One grid step: G lane-packed groups of t_tile trees, all VMEM resident.

    x_ref   : [M, GH]     bf16  packed node embeddings (roots-first rows;
                                lane group g = one independent set of trees)
    a_ref   : [M, M]      bf16  block-diagonal normalized adjacency (shared)
    w_ref   : [L, GH, GH] bf16  block-diagonal per-layer GCNConv weights
    bgb_ref : [L, 3, GH]  f32   packed (bias, gamma, beta), lane-tiled x G
    s_ref   : [GH, GH]    f32   0/1 group-sum selector (segmented LayerNorm)
    wout_ref: [GH, GH]    bf16  block-diagonal zero-padded output projection
    out_ref : [t_tile,GH] f32   root logits (group g -> lanes [g*H, g*H+C))
    xres_ref: [M, GH]     f32   VMEM scratch holding the residual stream
    """
    xres_ref[...] = x_ref[...].astype(jnp.float32)
    a = a_ref[...]
    s = s_ref[...]
    for l in range(num_layers):
        x = xres_ref[...]
        bgb = bgb_ref[l]                                          # [3, GH]
        bias, gam, bet = bgb[0:1, :], bgb[1:2, :], bgb[2:3, :]
        # GCNConv: normalized aggregation of X @ W, plus bias.
        h = jnp.dot(x.astype(jnp.bfloat16), w_ref[l],
                    preferred_element_type=jnp.float32)           # [M, GH]
        h = jnp.dot(a, h.astype(jnp.bfloat16),
                    preferred_element_type=jnp.float32) + bias    # [M, GH]
        # ReLU + residual.
        x = x + jnp.maximum(h, 0.0)
        # Segmented LayerNorm over each H-lane group (two-pass variance).
        # x @ S returns the group sum broadcast to every lane of the group.
        mean = jnp.dot(x, s, preferred_element_type=jnp.float32) * inv_h
        xc = x - mean
        var = jnp.dot(xc * xc, s, preferred_element_type=jnp.float32) * inv_h
        xres_ref[...] = xc * jax.lax.rsqrt(var + eps) * gam + bet
    # Roots-first layout: rows [0, t_tile) hold the roots of every lane group.
    out_ref[...] = jnp.dot(xres_ref[0:t_tile, :].astype(jnp.bfloat16),
                           wout_ref[...], preferred_element_type=jnp.float32)


def build_tree_norm_adj(edge_index_tree, n):
    """GCN-normalized adjacency of one tree (PyG gcn_norm with self loops)."""
    src, dst = edge_index_tree[0], edge_index_tree[1]
    a = jnp.zeros((n, n), jnp.float32).at[dst, src].add(1.0)   # src -> dst
    a = a + jnp.eye(n, dtype=jnp.float32)                      # self loops
    deg = jnp.sum(a, axis=1)
    dinv = jnp.where(deg > 0.0, jax.lax.rsqrt(deg), 0.0)
    return a * dinv[:, None] * dinv[None, :]                   # D^-1/2(A+I)D^-1/2


def build_block_layout(a_tree, n, t_tile):
    """Roots-first local layout + block-diag adjacency + inverse row maps."""
    # loc[t, j] = row of node j of local tree t inside one lane group's block.
    loc = jnp.concatenate(
        [jnp.arange(t_tile, dtype=jnp.int32)[:, None],          # roots first
         (t_tile + jnp.arange(t_tile, dtype=jnp.int32)[:, None] * (n - 1)
          + jnp.arange(n - 1, dtype=jnp.int32)[None, :])],
        axis=1)                                                 # [t_tile, n]
    m = t_tile * n
    rows = loc[:, :, None]
    cols = loc[:, None, :]
    a_blk = jnp.zeros((m, m), jnp.float32).at[rows, cols].set(
        jnp.broadcast_to(a_tree, (t_tile, n, n)))
    inv_t = jnp.zeros((m,), jnp.int32).at[loc.reshape(-1)].set(
        jnp.repeat(jnp.arange(t_tile, dtype=jnp.int32), n))
    inv_j = jnp.zeros((m,), jnp.int32).at[loc.reshape(-1)].set(
        jnp.tile(jnp.arange(n, dtype=jnp.int32), t_tile))
    return a_blk, inv_t, inv_j


def gcn_forward(x_nodes, edge_index_tree, cls_emb, nbr_emb, W, b, gamma, beta,
                Wout, num_nodes, num_trees, num_layers, t_tile=8, g_pack=4):
    # g_pack * H is the packed lane width. 128 (g_pack=4 at H=32) saturates
    # the v5e MXU and keeps every vreg lane-dense; on v6e/v7x g_pack=8 (256
    # lanes) is also valid if num_trees keeps the grid at >= 2 steps.
    H = cls_emb.shape[1]
    C = Wout.shape[1]
    n = num_nodes
    L = num_layers
    GH = g_pack * H
    M = t_tile * n
    trees_per_step = g_pack * t_tile
    assert num_trees % trees_per_step == 0
    assert M % 8 == 0 and GH % 128 == 0 and C <= H
    n_grid = num_trees // trees_per_step

    # --- static graph glue (structure never changes; computed once) ---
    a_tree = build_tree_norm_adj(edge_index_tree, n)            # [n, n]
    a_blk, inv_t, inv_j = build_block_layout(a_tree, n, t_tile) # [M, M]

    # --- embeddings + lane-packed, roots-first slab (plain-JAX glue) ---
    x_emb = cls_emb[x_nodes[:, 0]] + nbr_emb[x_nodes[:, 1]]     # [N, H] f32
    x_emb = x_emb.reshape(num_trees, n, H)
    i_idx = jnp.arange(n_grid, dtype=jnp.int32)[:, None, None]
    g_idx = jnp.arange(g_pack, dtype=jnp.int32)[None, None, :]
    tree_idx = i_idx * trees_per_step + g_idx * t_tile + inv_t[None, :, None]
    node_idx = jnp.broadcast_to(inv_j[None, :, None], tree_idx.shape)
    x_packed = x_emb[tree_idx, node_idx]                        # [ng, M, G, H]
    x_packed = x_packed.reshape(n_grid * M, GH).astype(jnp.bfloat16)

    # --- parameter packing for the lane-packed layout ---
    W_blk = jnp.zeros((L, GH, GH), jnp.float32)
    Wout_blk = jnp.zeros((GH, GH), jnp.float32)
    for g in range(g_pack):
        W_blk = W_blk.at[:, g * H:(g + 1) * H, g * H:(g + 1) * H].set(W)
        Wout_blk = Wout_blk.at[g * H:(g + 1) * H, g * H:g * H + C].set(Wout)
    W_blk = W_blk.astype(jnp.bfloat16)
    Wout_blk = Wout_blk.astype(jnp.bfloat16)
    bgb = jnp.stack([jnp.tile(b, (1, g_pack)),
                     jnp.tile(gamma, (1, g_pack)),
                     jnp.tile(beta, (1, g_pack))], axis=1)      # [L, 3, GH]
    lane = jnp.arange(GH, dtype=jnp.int32)
    sel = (lane[:, None] // H == lane[None, :] // H).astype(jnp.float32)
    a_blk_bf = a_blk.astype(jnp.bfloat16)

    kernel = functools.partial(gcn_block_kernel, num_layers=L, t_tile=t_tile,
                               inv_h=1.0 / H, eps=1e-5)

    # Advisory cost hint so XLA overlaps the tiny kernel with the glue ops.
    flops = n_grid * (2 * L * (3 * M * GH * GH + M * M * GH)
                      + 2 * t_tile * GH * GH)
    transcendentals = n_grid * L * M * GH
    bytes_accessed = (x_packed.size * 2 + a_blk_bf.size * 2 + W_blk.size * 2
                      + bgb.size * 4 + sel.size * 4 + Wout_blk.size * 2
                      + n_grid * t_tile * GH * 4)

    out = pl.pallas_call(
        kernel,
        out_shape=jax.ShapeDtypeStruct((n_grid * t_tile, GH), jnp.float32),
        grid=(n_grid,),
        in_specs=[
            pl.BlockSpec((M, GH), lambda i: (i, 0)),            # streamed x
            pl.BlockSpec((M, M), lambda i: (0, 0)),             # resident A
            pl.BlockSpec((L, GH, GH), lambda i: (0, 0, 0)),     # resident W
            pl.BlockSpec((L, 3, GH), lambda i: (0, 0, 0)),      # resident bgb
            pl.BlockSpec((GH, GH), lambda i: (0, 0)),           # resident sel
            pl.BlockSpec((GH, GH), lambda i: (0, 0)),           # resident Wout
        ],
        out_specs=pl.BlockSpec((t_tile, GH), lambda i: (i, 0)),
        scratch_shapes=[pltpu.VMEM((M, GH), jnp.float32)],
        compiler_params=pltpu.CompilerParams(
            dimension_semantics=("parallel",)),                 # 2 TCs on v7x
        cost_estimate=pl.CostEstimate(flops=int(flops),
                                      transcendentals=int(transcendentals),
                                      bytes_accessed=int(bytes_accessed)),
    )(x_packed, a_blk_bf, W_blk, bgb, sel, Wout_blk)

    # Un-pack lanes -> tree-major logits. Row i*t_tile+t / lanes [g*H, g*H+C)
    # hold the logits of tree i*trees_per_step + g*t_tile + t.
    out = out.reshape(n_grid, t_tile, g_pack, H)
    out = jnp.transpose(out, (0, 2, 1, 3)).reshape(num_trees, H)
    return out[:, :C]                                           # [num_trees, C]


if __name__ == "__main__":
    # Depth-2 binary trees (7 nodes each), 64 trees, hidden=32, 3 GCN layers,
    # 8 output classes.  t_tile=8 trees per lane group, g_pack=4 lane groups
    # -> 32 trees / grid step, grid=(2,) parallel steps, slab [56, 128].
    input_dim = 8
    hidden_dim = 32
    output_dim = 8
    num_layers = 3
    num_nodes = 7
    num_trees = 64
    t_tile = 8
    g_pack = 4
    N = num_nodes * num_trees

    key = jax.random.PRNGKey(0)
    keys = jax.random.split(key, 8)

    # --- deterministic parameter init (shapes from GCN.__init__) ---
    cls_emb = 0.1 * jax.random.normal(keys[0], (input_dim, hidden_dim), jnp.float32)
    nbr_emb = 0.1 * jax.random.normal(keys[1], (input_dim + 1, hidden_dim), jnp.float32)
    scale = 1.0 / jnp.sqrt(jnp.float32(hidden_dim))
    W = scale * jax.random.normal(keys[2], (num_layers, hidden_dim, hidden_dim), jnp.float32)
    b = 0.01 * jax.random.normal(keys[3], (num_layers, hidden_dim), jnp.float32)
    gamma = jnp.ones((num_layers, hidden_dim), jnp.float32)
    beta = jnp.zeros((num_layers, hidden_dim), jnp.float32)
    Wout = scale * jax.random.normal(keys[4], (hidden_dim, output_dim), jnp.float32)

    # --- deterministic inputs: data.x = [N, 2] int (class id, neighbour cnt) ---
    x_classes = jax.random.randint(keys[5], (N,), 0, input_dim, dtype=jnp.int32)
    x_neighb = jax.random.randint(keys[6], (N,), 0, input_dim + 1, dtype=jnp.int32)
    x_nodes = jnp.stack([x_classes, x_neighb], axis=1)

    # Edges of a single binary tree (local node indices); every tree shares
    # this structure, so only one copy is needed.
    edges = []
    for p in range(num_nodes):
        for c in (2 * p + 1, 2 * p + 2):
            if c < num_nodes:
                edges.append((c, p))   # child -> parent
                edges.append((p, c))   # parent -> child
    edge_index_tree = jnp.asarray(edges, dtype=jnp.int32).T     # [2, E_tree]

    logits = gcn_forward(x_nodes, edge_index_tree, cls_emb, nbr_emb, W, b,
                         gamma, beta, Wout, num_nodes, num_trees, num_layers,
                         t_tile=t_tile, g_pack=g_pack)
    jax.block_until_ready(logits)
    assert logits.shape == (num_trees, output_dim)
    print("KERNEL_OK")
</pallas_src>

<mosaic_0001>
module attributes {stable_mosaic.version = 11 : i64} {
  func.func @gcn_block_kernel(%arg0: i32, %arg1: memref<56x128xbf16, #tpu.memory_space<vmem>>, %arg2: memref<56x56xbf16, #tpu.memory_space<vmem>>, %arg3: memref<3x128x128xbf16, #tpu.memory_space<vmem>>, %arg4: memref<3x3x128xf32, #tpu.memory_space<vmem>>, %arg5: memref<128x128xf32, #tpu.memory_space<vmem>>, %arg6: memref<128x128xbf16, #tpu.memory_space<vmem>>, %arg7: memref<8x128xf32, #tpu.memory_space<vmem>>, %arg8: memref<56x128xf32, #tpu.memory_space<vmem>>) attributes {dimension_semantics = [#tpu.dimension_semantics<parallel>], iteration_bounds = array<i64: 2>, scalar_prefetch = 0 : i64, scratch_operands = 1 : i64, tpu.core_type = #tpu.core_type<tc>, window_params = [{transform_indices = @transform_0, window_bounds = array<i64: 56, 128>}, {pipeline_mode = #tpu.pipeline_mode<synchronous>, transform_indices = @transform_1, window_bounds = array<i64: 56, 56>}, {pipeline_mode = #tpu.pipeline_mode<synchronous>, transform_indices = @transform_2, window_bounds = array<i64: 3, 128, 128>}, {pipeline_mode = #tpu.pipeline_mode<synchronous>, transform_indices = @transform_3, window_bounds = array<i64: 3, 3, 128>}, {pipeline_mode = #tpu.pipeline_mode<synchronous>, transform_indices = @transform_4, window_bounds = array<i64: 128, 128>}, {pipeline_mode = #tpu.pipeline_mode<synchronous>, transform_indices = @transform_5, window_bounds = array<i64: 128, 128>}, {transform_indices = @transform_6, window_bounds = array<i64: 8, 128>}]} {
    %c0 = arith.constant 0 : index
    %c0_0 = arith.constant 0 : index
    %0 = vector.load %arg1[%c0, %c0_0] : memref<56x128xbf16, #tpu.memory_space<vmem>>, vector<56x128xbf16>
    %1 = arith.extf %0 : vector<56x128xbf16> to vector<56x128xf32>
    %c0_1 = arith.constant 0 : index
    %c0_2 = arith.constant 0 : index
    %2 = vector.load %arg8[%c0_1, %c0_2] : memref<56x128xf32, #tpu.memory_space<vmem>>, vector<56x128xf32>
    tpu.vector_store %arg8[%c0_1, %c0_2], %1 {strides = array<i32>} : memref<56x128xf32, #tpu.memory_space<vmem>>, vector<56x128xf32>,
    %c0_3 = arith.constant 0 : index
    %c0_4 = arith.constant 0 : index
    %3 = vector.load %arg2[%c0_3, %c0_4] : memref<56x56xbf16, #tpu.memory_space<vmem>>, vector<56x56xbf16>
    %c0_5 = arith.constant 0 : index
    %c0_6 = arith.constant 0 : index
    %4 = vector.load %arg5[%c0_5, %c0_6] : memref<128x128xf32, #tpu.memory_space<vmem>>, vector<128x128xf32>
    %c0_7 = arith.constant 0 : index
    %c0_8 = arith.constant 0 : index
    %5 = vector.load %arg8[%c0_7, %c0_8] : memref<56x128xf32, #tpu.memory_space<vmem>>, vector<56x128xf32>
    %c0_9 = arith.constant 0 : index
    %c0_10 = arith.constant 0 : index
    %c0_11 = arith.constant 0 : index
    %6 = vector.load %arg4[%c0_9, %c0_10, %c0_11] : memref<3x3x128xf32, #tpu.memory_space<vmem>>, vector<1x3x128xf32>
    %7 = vector.shape_cast %6 : vector<1x3x128xf32> to vector<3x128xf32>
    %8 = vector.extract_strided_slice %7 {offsets = [0, 0], sizes = [1, 128], strides = [1, 1]} : vector<3x128xf32> to vector<1x128xf32>
    %9 = vector.extract_strided_slice %7 {offsets = [1, 0], sizes = [1, 128], strides = [1, 1]} : vector<3x128xf32> to vector<1x128xf32>
    %10 = vector.extract_strided_slice %7 {offsets = [2, 0], sizes = [1, 128], strides = [1, 1]} : vector<3x128xf32> to vector<1x128xf32>
    %11 = arith.truncf %5 : vector<56x128xf32> to vector<56x128xbf16>
    %c0_12 = arith.constant 0 : index
    %c0_13 = arith.constant 0 : index
    %c0_14 = arith.constant 0 : index
    %12 = vector.load %arg3[%c0_12, %c0_13, %c0_14] : memref<3x128x128xbf16, #tpu.memory_space<vmem>>, vector<1x128x128xbf16>
    %13 = vector.shape_cast %12 : vector<1x128x128xbf16> to vector<128x128xbf16>
    %cst = arith.constant dense<0.000000e+00> : vector<56x128xf32>
    %14 = tpu.matmul %11, %13, %cst {dimension_numbers = #tpu.dot_dimension_numbers<[1], [0], [0], [1], [0, 0, 1, 1], [], []>} : vector<56x128xbf16>, vector<128x128xbf16>, vector<56x128xf32> -> vector<56x128xf32>
    %15 = arith.truncf %14 : vector<56x128xf32> to vector<56x128xbf16>
    %cst_15 = arith.constant dense<0.000000e+00> : vector<56x128xf32>
    %16 = tpu.matmul %3, %15, %cst_15 {dimension_numbers = #tpu.dot_dimension_numbers<[1], [0], [0], [1], [0, 0, 1, 1], [], []>} : vector<56x56xbf16>, vector<56x128xbf16>, vector<56x128xf32> -> vector<56x128xf32>
    %17 = vector.broadcast %8 : vector<1x128xf32> to vector<56x128xf32>
    %18 = arith.addf %16, %17 : vector<56x128xf32>
    %cst_16 = arith.constant 0.000000e+00 : f32
    %19 = vector.broadcast %cst_16 : f32 to vector<56x128xf32>
    %20 = arith.maximumf %18, %19 : vector<56x128xf32>
    %21 = arith.addf %5, %20 : vector<56x128xf32>
    %cst_17 = arith.constant dense<0.000000e+00> : vector<56x128xf32>
    %22 = tpu.matmul %21, %4, %cst_17 {dimension_numbers = #tpu.dot_dimension_numbers<[1], [0], [0], [1], [0, 0, 1, 1], [], []>} : vector<56x128xf32>, vector<128x128xf32>, vector<56x128xf32> -> vector<56x128xf32>
    %cst_18 = arith.constant 3.125000e-02 : f32
    %23 = vector.broadcast %cst_18 : f32 to vector<56x128xf32>
    %24 = arith.mulf %22, %23 : vector<56x128xf32>
    %25 = arith.subf %21, %24 : vector<56x128xf32>
    %26 = arith.mulf %25, %25 : vector<56x128xf32>
    %cst_19 = arith.constant dense<0.000000e+00> : vector<56x128xf32>
    %27 = tpu.matmul %26, %4, %cst_19 {dimension_numbers = #tpu.dot_dimension_numbers<[1], [0], [0], [1], [0, 0, 1, 1], [], []>} : vector<56x128xf32>, vector<128x128xf32>, vector<56x128xf32> -> vector<56x128xf32>
    %cst_20 = arith.constant 3.125000e-02 : f32
    %28 = vector.broadcast %cst_20 : f32 to vector<56x128xf32>
    %29 = arith.mulf %27, %28 : vector<56x128xf32>
    %cst_21 = arith.constant 9.99999974E-6 : f32
    %30 = vector.broadcast %cst_21 : f32 to vector<56x128xf32>
    %31 = arith.addf %29, %30 : vector<56x128xf32>
    %32 = math.rsqrt %31 : vector<56x128xf32>
    %33 = arith.mulf %25, %32 : vector<56x128xf32>
    %34 = vector.broadcast %9 : vector<1x128xf32> to vector<56x128xf32>
    %35 = arith.mulf %33, %34 : vector<56x128xf32>
    %36 = vector.broadcast %10 : vector<1x128xf32> to vector<56x128xf32>
    %37 = arith.addf %35, %36 : vector<56x128xf32>
    %c0_22 = arith.constant 0 : index
    %c0_23 = arith.constant 0 : index
    %38 = vector.load %arg8[%c0_22, %c0_23] : memref<56x128xf32, #tpu.memory_space<vmem>>, vector<56x128xf32>
    tpu.vector_store %arg8[%c0_22, %c0_23], %37 {strides = array<i32>} : memref<56x128xf32, #tpu.memory_space<vmem>>, vector<56x128xf32>,
    %c0_24 = arith.constant 0 : index
    %c0_25 = arith.constant 0 : index
    %39 = vector.load %arg8[%c0_24, %c0_25] : memref<56x128xf32, #tpu.memory_space<vmem>>, vector<56x128xf32>
    %c1 = arith.constant 1 : index
    %c0_26 = arith.constant 0 : index
    %c0_27 = arith.constant 0 : index
    %40 = vector.load %arg4[%c1, %c0_26, %c0_27] : memref<3x3x128xf32, #tpu.memory_space<vmem>>, vector<1x3x128xf32>
    %41 = vector.shape_cast %40 : vector<1x3x128xf32> to vector<3x128xf32>
    %42 = vector.extract_strided_slice %41 {offsets = [0, 0], sizes = [1, 128], strides = [1, 1]} : vector<3x128xf32> to vector<1x128xf32>
    %43 = vector.extract_strided_slice %41 {offsets = [1, 0], sizes = [1, 128], strides = [1, 1]} : vector<3x128xf32> to vector<1x128xf32>
    %44 = vector.extract_strided_slice %41 {offsets = [2, 0], sizes = [1, 128], strides = [1, 1]} : vector<3x128xf32> to vector<1x128xf32>
    %45 = arith.truncf %39 : vector<56x128xf32> to vector<56x128xbf16>
    %c1_28 = arith.constant 1 : index
    %c0_29 = arith.constant 0 : index
    %c0_30 = arith.constant 0 : index
    %46 = vector.load %arg3[%c1_28, %c0_29, %c0_30] : memref<3x128x128xbf16, #tpu.memory_space<vmem>>, vector<1x128x128xbf16>
    %47 = vector.shape_cast %46 : vector<1x128x128xbf16> to vector<128x128xbf16>
    %cst_31 = arith.constant dense<0.000000e+00> : vector<56x128xf32>
    %48 = tpu.matmul %45, %47, %cst_31 {dimension_numbers = #tpu.dot_dimension_numbers<[1], [0], [0], [1], [0, 0, 1, 1], [], []>} : vector<56x128xbf16>, vector<128x128xbf16>, vector<56x128xf32> -> vector<56x128xf32>
    %49 = arith.truncf %48 : vector<56x128xf32> to vector<56x128xbf16>
    %cst_32 = arith.constant dense<0.000000e+00> : vector<56x128xf32>
    %50 = tpu.matmul %3, %49, %cst_32 {dimension_numbers = #tpu.dot_dimension_numbers<[1], [0], [0], [1], [0, 0, 1, 1], [], []>} : vector<56x56xbf16>, vector<56x128xbf16>, vector<56x128xf32> -> vector<56x128xf32>
    %51 = vector.broadcast %42 : vector<1x128xf32> to vector<56x128xf32>
    %52 = arith.addf %50, %51 : vector<56x128xf32>
    %cst_33 = arith.constant 0.000000e+00 : f32
    %53 = vector.broadcast %cst_33 : f32 to vector<56x128xf32>
    %54 = arith.maximumf %52, %53 : vector<56x128xf32>
    %55 = arith.addf %39, %54 : vector<56x128xf32>
    %cst_34 = arith.constant dense<0.000000e+00> : vector<56x128xf32>
    %56 = tpu.matmul %55, %4, %cst_34 {dimension_numbers = #tpu.dot_dimension_numbers<[1], [0], [0], [1], [0, 0, 1, 1], [], []>} : vector<56x128xf32>, vector<128x128xf32>, vector<56x128xf32> -> vector<56x128xf32>
    %cst_35 = arith.constant 3.125000e-02 : f32
    %57 = vector.broadcast %cst_35 : f32 to vector<56x128xf32>
    %58 = arith.mulf %56, %57 : vector<56x128xf32>
    %59 = arith.subf %55, %58 : vector<56x128xf32>
    %60 = arith.mulf %59, %59 : vector<56x128xf32>
    %cst_36 = arith.constant dense<0.000000e+00> : vector<56x128xf32>
    %61 = tpu.matmul %60, %4, %cst_36 {dimension_numbers = #tpu.dot_dimension_numbers<[1], [0], [0], [1], [0, 0, 1, 1], [], []>} : vector<56x128xf32>, vector<128x128xf32>, vector<56x128xf32> -> vector<56x128xf32>
    %cst_37 = arith.constant 3.125000e-02 : f32
    %62 = vector.broadcast %cst_37 : f32 to vector<56x128xf32>
    %63 = arith.mulf %61, %62 : vector<56x128xf32>
    %cst_38 = arith.constant 9.99999974E-6 : f32
    %64 = vector.broadcast %cst_38 : f32 to vector<56x128xf32>
    %65 = arith.addf %63, %64 : vector<56x128xf32>
    %66 = math.rsqrt %65 : vector<56x128xf32>
    %67 = arith.mulf %59, %66 : vector<56x128xf32>
    %68 = vector.broadcast %43 : vector<1x128xf32> to vector<56x128xf32>
    %69 = arith.mulf %67, %68 : vector<56x128xf32>
    %70 = vector.broadcast %44 : vector<1x128xf32> to vector<56x128xf32>
    %71 = arith.addf %69, %70 : vector<56x128xf32>
    %c0_39 = arith.constant 0 : index
    %c0_40 = arith.constant 0 : index
    %72 = vector.load %arg8[%c0_39, %c0_40] : memref<56x128xf32, #tpu.memory_space<vmem>>, vector<56x128xf32>
    tpu.vector_store %arg8[%c0_39, %c0_40], %71 {strides = array<i32>} : memref<56x128xf32, #tpu.memory_space<vmem>>, vector<56x128xf32>,
    %c0_41 = arith.constant 0 : index
    %c0_42 = arith.constant 0 : index
    %73 = vector.load %arg8[%c0_41, %c0_42] : memref<56x128xf32, #tpu.memory_space<vmem>>, vector<56x128xf32>
    %c2 = arith.constant 2 : index
    %c0_43 = arith.constant 0 : index
    %c0_44 = arith.constant 0 : index
    %74 = vector.load %arg4[%c2, %c0_43, %c0_44] : memref<3x3x128xf32, #tpu.memory_space<vmem>>, vector<1x3x128xf32>
    %75 = vector.shape_cast %74 : vector<1x3x128xf32> to vector<3x128xf32>
    %76 = vector.extract_strided_slice %75 {offsets = [0, 0], sizes = [1, 128], strides = [1, 1]} : vector<3x128xf32> to vector<1x128xf32>
    %77 = vector.extract_strided_slice %75 {offsets = [1, 0], sizes = [1, 128], strides = [1, 1]} : vector<3x128xf32> to vector<1x128xf32>
    %78 = vector.extract_strided_slice %75 {offsets = [2, 0], sizes = [1, 128], strides = [1, 1]} : vector<3x128xf32> to vector<1x128xf32>
    %79 = arith.truncf %73 : vector<56x128xf32> to vector<56x128xbf16>
    %c2_45 = arith.constant 2 : index
    %c0_46 = arith.constant 0 : index
    %c0_47 = arith.constant 0 : index
    %80 = vector.load %arg3[%c2_45, %c0_46, %c0_47] : memref<3x128x128xbf16, #tpu.memory_space<vmem>>, vector<1x128x128xbf16>
    %81 = vector.shape_cast %80 : vector<1x128x128xbf16> to vector<128x128xbf16>
    %cst_48 = arith.constant dense<0.000000e+00> : vector<56x128xf32>
    %82 = tpu.matmul %79, %81, %cst_48 {dimension_numbers = #tpu.dot_dimension_numbers<[1], [0], [0], [1], [0, 0, 1, 1], [], []>} : vector<56x128xbf16>, vector<128x128xbf16>, vector<56x128xf32> -> vector<56x128xf32>
    %83 = arith.truncf %82 : vector<56x128xf32> to vector<56x128xbf16>
    %cst_49 = arith.constant dense<0.000000e+00> : vector<56x128xf32>
    %84 = tpu.matmul %3, %83, %cst_49 {dimension_numbers = #tpu.dot_dimension_numbers<[1], [0], [0], [1], [0, 0, 1, 1], [], []>} : vector<56x56xbf16>, vector<56x128xbf16>, vector<56x128xf32> -> vector<56x128xf32>
    %85 = vector.broadcast %76 : vector<1x128xf32> to vector<56x128xf32>
    %86 = arith.addf %84, %85 : vector<56x128xf32>
    %cst_50 = arith.constant 0.000000e+00 : f32
    %87 = vector.broadcast %cst_50 : f32 to vector<56x128xf32>
    %88 = arith.maximumf %86, %87 : vector<56x128xf32>
    %89 = arith.addf %73, %88 : vector<56x128xf32>
    %cst_51 = arith.constant dense<0.000000e+00> : vector<56x128xf32>
    %90 = tpu.matmul %89, %4, %cst_51 {dimension_numbers = #tpu.dot_dimension_numbers<[1], [0], [0], [1], [0, 0, 1, 1], [], []>} : vector<56x128xf32>, vector<128x128xf32>, vector<56x128xf32> -> vector<56x128xf32>
    %cst_52 = arith.constant 3.125000e-02 : f32
    %91 = vector.broadcast %cst_52 : f32 to vector<56x128xf32>
    %92 = arith.mulf %90, %91 : vector<56x128xf32>
    %93 = arith.subf %89, %92 : vector<56x128xf32>
    %94 = arith.mulf %93, %93 : vector<56x128xf32>
    %cst_53 = arith.constant dense<0.000000e+00> : vector<56x128xf32>
    %95 = tpu.matmul %94, %4, %cst_53 {dimension_numbers = #tpu.dot_dimension_numbers<[1], [0], [0], [1], [0, 0, 1, 1], [], []>} : vector<56x128xf32>, vector<128x128xf32>, vector<56x128xf32> -> vector<56x128xf32>
    %cst_54 = arith.constant 3.125000e-02 : f32
    %96 = vector.broadcast %cst_54 : f32 to vector<56x128xf32>
    %97 = arith.mulf %95, %96 : vector<56x128xf32>
    %cst_55 = arith.constant 9.99999974E-6 : f32
    %98 = vector.broadcast %cst_55 : f32 to vector<56x128xf32>
    %99 = arith.addf %97, %98 : vector<56x128xf32>
    %100 = math.rsqrt %99 : vector<56x128xf32>
    %101 = arith.mulf %93, %100 : vector<56x128xf32>
    %102 = vector.broadcast %77 : vector<1x128xf32> to vector<56x128xf32>
    %103 = arith.mulf %101, %102 : vector<56x128xf32>
    %104 = vector.broadcast %78 : vector<1x128xf32> to vector<56x128xf32>
    %105 = arith.addf %103, %104 : vector<56x128xf32>
    %c0_56 = arith.constant 0 : index
    %c0_57 = arith.constant 0 : index
    %106 = vector.load %arg8[%c0_56, %c0_57] : memref<56x128xf32, #tpu.memory_space<vmem>>, vector<56x128xf32>
    tpu.vector_store %arg8[%c0_56, %c0_57], %105 {strides = array<i32>} : memref<56x128xf32, #tpu.memory_space<vmem>>, vector<56x128xf32>,
    %c0_58 = arith.constant 0 : index
    %c0_59 = arith.constant 0 : index
    %107 = vector.load %arg8[%c0_58, %c0_59] : memref<56x128xf32, #tpu.memory_space<vmem>>, vector<8x128xf32>
    %108 = arith.truncf %107 : vector<8x128xf32> to vector<8x128xbf16>
    %c0_60 = arith.constant 0 : index
    %c0_61 = arith.constant 0 : index
    %109 = vector.load %arg6[%c0_60, %c0_61] : memref<128x128xbf16, #tpu.memory_space<vmem>>, vector<128x128xbf16>
    %cst_62 = arith.constant dense<0.000000e+00> : vector<8x128xf32>
    %110 = tpu.matmul %108, %109, %cst_62 {dimension_numbers = #tpu.dot_dimension_numbers<[1], [0], [0], [1], [0, 0, 1, 1], [], []>} : vector<8x128xbf16>, vector<128x128xbf16>, vector<8x128xf32> -> vector<8x128xf32>
    %c0_63 = arith.constant 0 : index
    %c0_64 = arith.constant 0 : index
    %111 = vector.load %arg7[%c0_63, %c0_64] : memref<8x128xf32, #tpu.memory_space<vmem>>, vector<8x128xf32>
    tpu.vector_store %arg7[%c0_63, %c0_64], %110 {strides = array<i32>} : memref<8x128xf32, #tpu.memory_space<vmem>>, vector<8x128xf32>,
    return
  }
  func.func @transform_0(%arg0: i32) -> (i32, i32) {
    %c0_i32 = arith.constant 0 : i32
    %c0_i32_0 = arith.constant 0 : i32
    return %arg0, %c0_i32 : i32, i32
  }
  func.func @transform_1(%arg0: i32) -> (i32, i32) {
    %c0_i32 = arith.constant 0 : i32
    %c0_i32_0 = arith.constant 0 : i32
    %c0_i32_1 = arith.constant 0 : i32
    return %c0_i32, %c0_i32_0 : i32, i32
  }
  func.func @transform_2(%arg0: i32) -> (i32, i32, i32) {
    %c0_i32 = arith.constant 0 : i32
    %c0_i32_0 = arith.constant 0 : i32
    %c0_i32_1 = arith.constant 0 : i32
    %c0_i32_2 = arith.constant 0 : i32
    return %c0_i32, %c0_i32_0, %c0_i32_1 : i32, i32, i32
  }
  func.func @transform_3(%arg0: i32) -> (i32, i32, i32) {
    %c0_i32 = arith.constant 0 : i32
    %c0_i32_0 = arith.constant 0 : i32
    %c0_i32_1 = arith.constant 0 : i32
    %c0_i32_2 = arith.constant 0 : i32
    return %c0_i32, %c0_i32_0, %c0_i32_1 : i32, i32, i32
  }
  func.func @transform_4(%arg0: i32) -> (i32, i32) {
    %c0_i32 = arith.constant 0 : i32
    %c0_i32_0 = arith.constant 0 : i32
    %c0_i32_1 = arith.constant 0 : i32
    return %c0_i32, %c0_i32_0 : i32, i32
  }
  func.func @transform_5(%arg0: i32) -> (i32, i32) {
    %c0_i32 = arith.constant 0 : i32
    %c0_i32_0 = arith.constant 0 : i32
    %c0_i32_1 = arith.constant 0 : i32
    return %c0_i32, %c0_i32_0 : i32, i32
  }
  func.func @transform_6(%arg0: i32) -> (i32, i32) {
    %c0_i32 = arith.constant 0 : i32
    %c0_i32_0 = arith.constant 0 : i32
    return %arg0, %c0_i32 : i32, i32
  }
}

</mosaic_0001>

<bundles_post_ra>
// kernel: tpu_custom_call.1
= control target key start
LH: loop header
LB: loop body
LE: loop exit
PB: predicated region body
PF: predicated region fallthrough
CT: control target
= control target key end

     0   :  { %11 = vsyncpa [#allocation4], 0  ;;  %s4306_s0 = inlined_call_operand.hbm [shape: bf16[112,128], index: 0, kind: input, shape index: {}]   ;;  %s4307_s1 = inlined_call_operand.hbm [shape: bf16[56,56], index: 1, kind: input, shape index: {}]   ;;  %s4308_s2 = inlined_call_operand.hbm [shape: bf16[3,128,128], index: 2, kind: input, shape index: {}]   ;;  %s4309_s3 = inlined_call_operand.hbm [shape: f32[3,3,128], index: 3, kind: input, shape index: {}]   ;;  %s4310_s4 = inlined_call_operand.hbm [shape: f32[128,128], index: 4, kind: input, shape index: {}]   ;;  %s4311_s5 = inlined_call_operand.hbm [shape: bf16[128,128], index: 5, kind: input, shape index: {}]   ;;  %s4312_s6 = inlined_call_operand.hbm [shape: f32[16,128], index: 6, kind: output, shape index: {}]  }
   0x1   :  { %13 = vsyncpa [#allocation4 + $0x1], 0 }
   0x2   :  { %14 = vsyncpa [#allocation7], 0 }
   0x3   :  { %15 = vsyncpa [#allocation10], 0 }
   0x4   :  { %16 = vsyncpa [#allocation13], 0 }
   0x5   :  { %17 = vsyncpa [#allocation5], 0 }
   0x6   :  { %19 = vsyncpa [#allocation5 + $0x1], 0  ;;  %s3556_s21 = smov 0   ;;  %s3558_s22 = smov 0  }
   0x7   :  { %s3560_s23 = smov 0   ;;  %s3562_s24 = smov 0  }
   0x8 LB: > { %s3507_s25 = smov [#allocation6]   ;;  %s3577_s27 = sadd.s32 4294967295, %s3505_s24   ;;  %s3505_s24 = sphi %s3562_s24, %s4341_s24   ;;  %s3501_s23 = sphi %s3560_s23, %s4340_s23   ;;  %s3497_s22 = sphi %s3558_s22, %s4339_s22   ;;  %s3493_s21 = sphi %s3556_s21, %s4338_s21  }
   0x9   : > { %s199_s26 = sshll.u32 %s3507_s25, 4  ;;  %p2186_p0 = scmp.ge.s32.totalorder %s3505_s24, 1  ;;  %s3582_s26 = int_to_ptr.vmem [resolvable:$true] %s199_s26 }
   0xa   : > { %p4313_p1 = scmp.eq.s32.totalorder %s3577_s27, 0  ;;  %p187_p2 = scmp.lt.s32.totalorder %s3505_s24, 3 }
   0xb   : > { %s3508_s29 = smov [#allocation9]   ;;  %s3509_s8 = smov [#allocation8]  }
   0xc   : > { %p3584_p3 = pnand %p2186_p0, %p187_p2  ;;  %s225_s30 = sshll.u32 %s3508_s29, 4  ;;  %s3597_s30 = int_to_ptr.vmem [resolvable:$true] %s225_s30 }
   0xd   : > { %s212_s9 = sshll.u32 %s3509_s8, 4  ;;  %s3257_s12 = scalar_lea.hbm %s4307_s1, 448  ;;  %s3599_s9 = int_to_ptr.vmem [resolvable:$true] %s212_s9 }
   0xe   : > { %s4318_s28 = scalar_select %p3584_p3, 1, 0 }
   0xf   : > { %p3107_p5 = pneg %p3584_p3  ;;  %p3258_p7 = scmp.ne.s32.totalorder %s4307_s1, %s3257_s12 }
  0x10   : > { %p3264_p11 = scmp.lt.u32.totalorder %s3257_s12, %s4307_s1 }
  0x11   : > { %p3593_p6 = pnand %p3107_p5, %p4313_p1 }
  0x13   : > { %p3609_p8 = pneg %p3593_p6 }
  0x15   : > { %p3260_p9 = pnand %p3609_p8, %p3258_p7 }
  0x17   : > { %p3261_p10 = pneg %p3260_p9 }
  0x19   : > { %p3266_p12 = pnand %p3264_p11, %p3261_p10 }
  0x1b   : > { %3269 = shalt.err (!%p3266_p12)
}
  0x1c   : > { %s3270_s18 = scalar_lea.vmem %s3582_s26, 448  ;;  %p3278_p5 = scmp.lt.s32.totalorder %s3582_s26, %s3582_s26 }
  0x1d   : > { %p3271_p13 = scmp.ne.s32.totalorder %s3582_s26, %s3270_s18  ;;  %p3279_p4 = scmp.lt.s32.totalorder %s3270_s18, %s3270_s18 }
  0x1f   : > { %p3273_p0 = pnand %p3271_p13, %p3609_p8  ;;  %p3280_p7 = por %p3279_p4, %p3278_p5 }
  0x21   : > { %p3274_p2 = pneg %p3273_p0 }
  0x23   : > { %p3281_p9 = pnand %p3280_p7, %p3274_p2 }
  0x25   : > { %3284 = shalt.err (!%p3281_p9)
}
  0x26   : > { %s4315_s19 = smov 64   ;;  %s4316_s20 = smov 4  }
  0x27   : > { %3110 = dma.hbm_to_vmem [thread:$0]  (!%p3593_p6), %s4307_s1, 448, %s3582_s26, [#allocation7], %s4315_s19, %s4315_s19, %s4316_s20  }
  0x28   : > { %s3285_s11 = scalar_lea.hbm %s4309_s3, 192 }
  0x29   : > { %p3286_p4 = scmp.ne.s32.totalorder %s4309_s3, %s3285_s11  ;;  %p3292_p12 = scmp.lt.u32.totalorder %s3285_s11, %s4309_s3 }
  0x2b   : > { %p3288_p10 = pnand %p3286_p4, %p3609_p8 }
  0x2d   : > { %p3289_p11 = pneg %p3288_p10 }
  0x2f   : > { %p3294_p13 = pnand %p3292_p12, %p3289_p11 }
  0x31   : > { %3297 = shalt.err (!%p3294_p13)
}
  0x32   : > { %s3298_s26 = scalar_lea.vmem %s3597_s30, 192  ;;  %p3306_p7 = scmp.lt.s32.totalorder %s3597_s30, %s3597_s30 }
  0x33   : > { %p3299_p0 = scmp.ne.s32.totalorder %s3597_s30, %s3298_s26  ;;  %p3307_p9 = scmp.lt.s32.totalorder %s3298_s26, %s3298_s26 }
  0x35   : > { %p3301_p2 = pnand %p3299_p0, %p3609_p8  ;;  %p3308_p4 = por %p3307_p9, %p3306_p7 }
  0x37   : > { %p3302_p5 = pneg %p3301_p2 }
  0x39   : > { %p3309_p10 = pnand %p3308_p4, %p3302_p5 }
  0x3b   : > { %3312 = shalt.err (!%p3309_p10)
}
  0x3c   : > { %3116 = dma.hbm_to_vmem [thread:$0]  (!%p3593_p6), %s4309_s3, 192, %s3597_s30, [#allocation10], %s4315_s19, %s4315_s19, %s4316_s20  }
  0x3d   : > { %s3313_s8 = scalar_lea.hbm %s4308_s2, 3072 }
  0x3e   : > { %p3314_p11 = scmp.ne.s32.totalorder %s4308_s2, %s3313_s8  ;;  %p3320_p0 = scmp.lt.u32.totalorder %s3313_s8, %s4308_s2 }
  0x40   : > { %p3316_p12 = pnand %p3314_p11, %p3609_p8 }
  0x42   : > { %p3317_p13 = pneg %p3316_p12 }
  0x44   : > { %p3322_p2 = pnand %p3320_p0, %p3317_p13 }
  0x46   : > { %3325 = shalt.err (!%p3322_p2)
}
  0x47   : > { %s3326_s30 = scalar_lea.vmem %s3599_s9, 3072  ;;  %p3334_p4 = scmp.lt.s32.totalorder %s3599_s9, %s3599_s9 }
  0x48   : > { %p3327_p5 = scmp.ne.s32.totalorder %s3599_s9, %s3326_s30  ;;  %p3335_p10 = scmp.lt.s32.totalorder %s3326_s30, %s3326_s30 }
  0x4a   : > { %p3329_p7 = pnand %p3327_p5, %p3609_p8  ;;  %p3336_p11 = por %p3335_p10, %p3334_p4 }
  0x4c   : > { %p3330_p9 = pneg %p3329_p7 }
  0x4e   : > { %p3337_p12 = pnand %p3336_p11, %p3330_p9 }
  0x50   : > { %3340 = shalt.err (!%p3337_p12)
}
  0x51   : > { %3113 = dma.hbm_to_vmem [thread:$0]  (!%p3593_p6), %s4308_s2, 3072, %s3599_s9, [#allocation7], %s4315_s19, %s4315_s19, %s4316_s20  }
  0x52   : > { %s3512_s26 = smov [#allocation11]   ;;  %s3341_s29 = scalar_lea.hbm %s4310_s4, 2048 }
  0x53   : > { %s238_s17 = sshll.u32 %s3512_s26, 4  ;;  %p3342_p13 = scmp.ne.s32.totalorder %s4310_s4, %s3341_s29  ;;  %s239_s17 = int_to_ptr.vmem [resolvable:$true] %s238_s17 }
  0x54   : > { %p3348_p5 = scmp.lt.u32.totalorder %s3341_s29, %s4310_s4 }
  0x55   : > { %p3344_p0 = pnand %p3342_p13, %p3609_p8 }
  0x57   : > { %p3345_p2 = pneg %p3344_p0 }
  0x59   : > { %p3350_p7 = pnand %p3348_p5, %p3345_p2 }
  0x5b   : > { %3353 = shalt.err (!%p3350_p7)
}
  0x5c   : > { %s3354_s9 = scalar_lea.vmem %s239_s17, 2048  ;;  %p3362_p11 = scmp.lt.s32.totalorder %s239_s17, %s239_s17 }
  0x5d   : > { %p3355_p9 = scmp.ne.s32.totalorder %s239_s17, %s3354_s9  ;;  %p3363_p12 = scmp.lt.s32.totalorder %s3354_s9, %s3354_s9 }
  0x5f   : > { %p3357_p4 = pnand %p3355_p9, %p3609_p8  ;;  %p3364_p1 = por %p3363_p12, %p3362_p11 }
  0x61   : > { %p3358_p10 = pneg %p3357_p4 }
  0x63   : > { %p3365_p3 = pnand %p3364_p1, %p3358_p10 }
  0x65   : > { %3368 = shalt.err (!%p3365_p3)
}
  0x66   : > { %s3513_s13 = smov 128   ;;  %s3514_s30 = smov 8  }
  0x67   : > { %3119 = dma.hbm_to_vmem [thread:$0]  (!%p3593_p6), %s4310_s4, 2048, %s239_s17, [#allocation10], %s3513_s13, %s3513_s13, %s3514_s30  }
  0x68   : > { %s3515_s26 = smov [#allocation12]   ;;  %s3369_s8 = scalar_lea.hbm %s4311_s5, 1024 }
  0x69   : > { %s251_s18 = sshll.u32 %s3515_s26, 4  ;;  %p3370_p1 = scmp.ne.s32.totalorder %s4311_s5, %s3369_s8  ;;  %s252_s18 = int_to_ptr.vmem [resolvable:$true] %s251_s18 }
  0x6a   : > { %p3376_p0 = scmp.lt.u32.totalorder %s3369_s8, %s4311_s5 }
  0x6b   : > { %p3372_p3 = pnand %p3370_p1, %p3609_p8 }
  0x6d   : > { %p3373_p13 = pneg %p3372_p3 }
  0x6f   : > { %p3378_p2 = pnand %p3376_p0, %p3373_p13 }
  0x71   : > { %3381 = shalt.err (!%p3378_p2)
}
  0x72   : > { %s3382_s17 = scalar_lea.vmem %s252_s18, 1024  ;;  %p3390_p4 = scmp.lt.s32.totalorder %s252_s18, %s252_s18 }
  0x73   : > { %p3383_p5 = scmp.ne.s32.totalorder %s252_s18, %s3382_s17  ;;  %p3391_p10 = scmp.lt.s32.totalorder %s3382_s17, %s3382_s17 }
  0x75   : > { %p3385_p7 = pnand %p3383_p5, %p3609_p8  ;;  %p3392_p11 = por %p3391_p10, %p3390_p4 }
  0x77   : > { %p3386_p9 = pneg %p3385_p7 }
  0x79   : > { %p3393_p12 = pnand %p3392_p11, %p3386_p9 }
  0x7b   : > { %3396 = shalt.err (!%p3393_p12)
}
  0x7c   : > { %3122 = dma.hbm_to_vmem [thread:$0]  (!%p3593_p6), %s4311_s5, 1024, %s252_s18, [#allocation13], %s4315_s19, %s4315_s19, %s4316_s20  }
  0x7d   : > { %s2185_s7 = sadd.s32 4294967294, %s3505_s24   ;;  %s3726_s15 = sadd.s32 1, %s3505_s24  }
  0x7e   : > { %s32_s14 = sadd.s32 1, %s3501_s23  ;;  %s29_s16 = ssub.s32 %s3505_s24, %s3726_s15 }
  0x7f   : > { %p39_p8 = scmp.ne.s32.totalorder %s3501_s23, %s3497_s22  ;;  %p30_p1 = scmp.eq.s32.totalorder %s29_s16, 0 }
  0x80   : > { %p40_p3 = scmp.eq.s32.totalorder %s3505_s24, 0  ;;  %p45_p13 = scmp.ne.s32.totalorder %s3497_s22, %s3493_s21 }
  0x81   : > { %p174_p0 = scmp.eq.s32.totalorder %s3577_s27, 1  ;;  %p4321_p5 = scmp.eq.s32.totalorder %s3577_s27, 0 }
  0x82   : > { %s3738_s26 = scalar_select %p30_p1, %s3501_s23, %s32_s14  }
  0x83   : > { %p41_p2 = por %p40_p3, %p39_p8  ;;  %p3742_p7 = por %p4321_p5, %p45_p13 }
  0x84   : > { %p3746_p6 = por %p174_p0, %p39_p8  ;;  %p180_p9 = scmp.eq.s32.totalorder %s2185_s7, 1 }
  0x85   : > { %p3136_p4 = scmp.lt.s32.totalorder %s3505_s24, 2  ;;  %s265_s29 = sand.u32 1, %s3501_s23  }
  0x86   : > { %s4323_s18 = scalar_select %p3746_p6, 1, 0 }
  0x87   : > { %p3752_p10 = por %p180_p9, %p45_p13  ;;  %s3081_s10 = smul.u32 28, %s265_s29 }
  0x88   : > { %p3756_p11 = pnand %p3136_p4, %p41_p2  ;;  %s2253_s12 = smul.u32 448, %s3505_s24 }
  0x89   : > { %s4324_s8 = scalar_select %p3752_p10, 1, 0 }
  0x8a   : > { %s3764_s13 = scalar_lea.hbm %s4306_s0, %s2253_s12  ;;  %s269_s30 = scalar_lea.vmem [#allocation3], %s3081_s10 }
  0x8b   : > { %s276_s7 = sshll.u32 %s269_s30, 4  ;;  %s3768_s14 = scalar_lea.sflag [#allocation4], %s265_s29  ;;  %s3766_s7 = int_to_ptr.vmem [resolvable:$true] %s276_s7 }
  0x8c   : > { %s3397_s16 = scalar_lea.hbm %s3764_s13, 448  ;;  %p3399_p8 = pneg %p3756_p11 }
  0x8d   : > { %p3398_p12 = scmp.ne.s32.totalorder %s3764_s13, %s3397_s16  ;;  %s3402_s17 = scalar_lea.hbm %s4306_s0, 896 }
  0x8e   : > { %p3403_p13 = scmp.lt.u32.totalorder %s3764_s13, %s4306_s0  ;;  %p3404_p0 = scmp.lt.u32.totalorder %s3402_s17, %s3397_s16 }
  0x8f   : > { %p3400_p1 = pnand %p3399_p8, %p3398_p12  ;;  %p3406_p5 = scmp.lt.u32.totalorder %s3397_s16, %s3764_s13 }
  0x90   : > { %p3405_p2 = por %p3404_p0, %p3403_p13 }
  0x91   : > { %p3401_p3 = pneg %p3400_p1 }
  0x92   : > { %p3407_p9 = por %p3406_p5, %p3405_p2 }
  0x94   : > { %p3408_p4 = pnand %p3407_p9, %p3401_p3 }
  0x96   : > { %3411 = shalt.err (!%p3408_p4)
}
  0x97   : > { %s3412_s29 = scalar_lea.vmem %s3766_s7, 448  ;;  %s3516_s10 = smov [#allocation3]  }
  0x98   : > { %p3413_p12 = scmp.ne.s32.totalorder %s3766_s7, %s3412_s29  ;;  %s3417_s30 = sshll.u32 %s3516_s10, 4  ;;  %s3418_s30 = int_to_ptr.vmem [resolvable:$false] %s3417_s30 }
  0x99   : > { %s3419_s19 = scalar_lea.vmem %s3418_s30, 896  ;;  %p3420_p6 = scmp.lt.s32.totalorder %s3766_s7, %s3418_s30 }
  0x9a   : > { %p3415_p1 = pnand %p3413_p12, %p3399_p8  ;;  %p3421_p13 = scmp.lt.s32.totalorder %s3419_s19, %s3412_s29 }
  0x9c   : > { %p3416_p10 = pneg %p3415_p1  ;;  %p3422_p0 = por %p3421_p13, %p3420_p6 }
  0x9e   : > { %p3423_p2 = pnand %p3422_p0, %p3416_p10 }
  0xa0   : > { %3426 = shalt.err (!%p3423_p2)
}
  0xa1   : > { %s4326_s20 = smov 4   ;;  %s4327_s16 = smov 64  }
  0xa2   : > { %3126 = dma.hbm_to_vmem [thread:$0]  (!%p3756_p11), %s3764_s13, 448, %s3766_s7, %s3768_s14, %s4327_s16, %s4327_s16, %s4326_s20  }
  0xa3   : > { %p4328_p8 = scmp.ne.s32.totalorder %s4318_s28, 0 }
  0xa4   : > { %s3802_s12 = sand.u32 (!%p4328_p8), 1, %s3497_s22  }
  0xa5   : > { %288 = sbr.rel (%p4328_p8) target bundleno = 3190 (0xc76), region = 44  ;;  %s291_s17 = scalar_lea.sflag (!%p4328_p8), [#allocation4], %s3802_s12 }
  0xa6   : > { %s3082_s9 = smul.u32 (!%p4328_p8), 28, %s3802_s12 }
  0xa8   : > { %s3806_s29 = scalar_lea.vmem (!%p4328_p8), [#allocation3], %s3082_s9 }
  0xac   : > { %3472 = dma.done.wait (%p3742_p7), %s291_s17, 448  }
  0xad   : > { %3474 = vsyncadd (%p3742_p7), %s291_s17, 4294966848  ;;  %p4329_p6 = scmp.eq.s32.totalorder %s3577_s27, 0 }
  0xaf   : > { %3476 = dma.done.wait (%p4329_p6), [#allocation7], 3520   ;;  %p4330_p10 = pmov %p4329_p6 }
  0xb0   : > { %p4331_p11 = pmov %p4329_p6 }
  0xb1   : > { %3478 = vsyncadd (%p4330_p10), [#allocation7], 4294963776 }
  0xb2   : > { %3480 = dma.done.wait (%p4331_p11), [#allocation10], 2240   ;;  %p4332_p3 = pmov %p4329_p6 }
  0xb4   : > { %3482 = vsyncadd (%p4332_p3), [#allocation10], 4294965056  ;;  %p4333_p5 = pmov %p4332_p3 }
  0xb5   : > { %p4334_p9 = pmov %p4332_p3 }
  0xb6   : > { %3484 = dma.done.wait (%p4333_p5), [#allocation13], 1024  }
  0xb7   : > { %3486 = vsyncadd (%p4334_p9), [#allocation13], 4294966272  ;;  %v3187_v0 = vld [vmem:[#allocation8] sm:$0xff]   ;;  %v3188_v1 = vld [vmem:[#allocation8 + $0x8] sm:$0xff]   ;;  %vm555_vm0 = vcmask 457728   ;;  %v3517_v17 = vmov 0.0|0.0   ;;  %v533_v56 = vlaneseq }
  0xb8   : > { %2476 = vmatprep.subr.bf16.mxu0 %v3187_v0  ;;  %v3189_v2 = vld [vmem:[#allocation8 + $0x10] sm:$0xff]   ;;  %v3190_v3 = vld [vmem:[#allocation8 + $0x18] sm:$0xff]   ;;  %v3191_v5 = vld [vmem:[#allocation8 + $0x20] sm:$0xff]   ;;  %vm568_vm1 = vcmask 1043456   ;;  %vm3518_vm2 = vmmov 0   ;;  %v3519_v55 = vmov 0.0  }
  0xb9   : > { %2477 = vmatpush3.bf16.msra.mxu0 %v3187_v0  ;;  %v3825_v4 = vld [vmem:[%s3806_s29] sm:$0xff]   ;;  %v3194_v8 = vld [vmem:[#allocation8 + $0x38] sm:$0xff]   ;;  %v3837_v11 = vld [vmem:[%s3806_s29 + $0x18] sm:$0xf]  ;;  %v3911_v57 = vshrl.u32 %v533_v56, 7  ;;  %s2200_s28 = sshll.u32 %s3802_s12, 3 }
  0xba   : > { %2478 = vmatprep.subr.bf16.mxu0 %v3188_v1  ;;  %2492 = vmatprep.mubr.bf16.mxu0 %v3825_v4  ;;  %v3192_v6 = vld [vmem:[#allocation8 + $0x28] sm:$0xff]   ;;  %v3193_v7 = vld [vmem:[#allocation8 + $0x30] sm:$0xff]   ;;  %v3832_v10 = vld [vmem:[%s3806_s29 + $0x10] sm:$0xff]   ;;  %v2268_v12 = vcombine.low %v3837_v11, %v3837_v11  ;;  %s342_s25 = scalar_lea.vmem [#allocation14], %s2200_s28  ;;  %s2250_s13 = sshll.u32 %s3577_s27, 7 }
  0xbb   : > { %v3829_v9 = vld [vmem:[%s3806_s29 + $0x8] sm:$0xff]   ;;  %v3841_v13 = vld [vmem:[#allocation6] sm:$0xff]   ;;  %v375_v18 = vld [vmem:[#allocation11 + $0x10] sm:$0xff]  ;;  %v3914_v58 = vsub.s32 0, %v3911_v57  ;;  %s2067_s11 = sshll.u32 %s342_s25, 4  ;;  %s4264_s10 = scalar_lea.hbm %s4312_s6, %s2250_s13  ;;  %s4259_s11 = int_to_ptr.vmem [resolvable:$true] %s2067_s11 }
  0xbc   : > { %2508 = vmatprep.mubr.msk.bf16.mxu1 %vm555_vm0, %v3841_v13  ;;  %v373_v14 = vld [vmem:[#allocation11] sm:$0xff]  ;;  %v374_v15 = vld [vmem:[#allocation11 + $0x8] sm:$0xff]  ;;  %v376_v19 = vld [vmem:[#allocation11 + $0x18] sm:$0xff]  ;;  %v2260_v62 = vunpack.c.l.bf16 %v3829_v9  ;;  %s2054_s30 = scalar_lea.sflag [#allocation5], %s3802_s12  ;;  %s3427_s19 = scalar_lea.vmem %s4259_s11, 128 }
  0xbd   : > { %2479 = vmatpush3.bf16.msra.mxu0 %v3188_v1  ;;  %v3845_v16 = vpack.c.bf16 %v374_v15, %v373_v14  ;;  %v3850_v20 = vpack.c.bf16 %v376_v19, %v375_v18  ;;  %v377_v21 = vld [vmem:[#allocation11 + $0x20] sm:$0xff]  ;;  %v378_v22 = vld [vmem:[#allocation11 + $0x28] sm:$0xff]  ;;  %v379_v24 = vld [vmem:[#allocation11 + $0x30] sm:$0xff]  ;;  %v2256_v1 = vunpack.c.l.bf16 %v3825_v4  ;;  %p3428_p7 = scmp.ne.s32.totalorder %s4259_s11, %s3427_s19  ;;  %p4335_p4 = scmp.ne.s32.totalorder %s4323_s18, 0 }
  0xbe   : > { %2480 = vmatprep.subr.bf16.mxu0 %v3189_v2  ;;  %v3854_v23 = vpack.c.bf16 %v378_v22, %v377_v21  ;;  %v380_v25 = vld [vmem:[#allocation11 + $0x38] sm:$0xff]  ;;  %v381_v27 = vld [vmem:[#allocation11 + $0x40] sm:$0xff]  ;;  %v382_v28 = vld [vmem:[#allocation11 + $0x48] sm:$0xff]  ;;  %s3520_s27 = smov [#allocation14]  }
  0xbf   : > { %v3858_v26 = vpack.c.bf16 %v380_v25, %v379_v24  ;;  %v3862_v29 = vpack.c.bf16 %v382_v28, %v381_v27  ;;  %v383_v30 = vld [vmem:[#allocation11 + $0x50] sm:$0xff]  ;;  %v384_v31 = vld [vmem:[#allocation11 + $0x58] sm:$0xff]  ;;  %v3872_v46 = vld [vmem:[#allocation6 + $0x8] sm:$0xff]   ;;  %p3429_p12 = pnand %p3428_p7, %p4335_p4  ;;  %s3431_s20 = sshll.u32 %s3520_s27, 4  ;;  %s3432_s20 = int_to_ptr.vmem [resolvable:$false] %s3431_s20 }
  0xc0   : > { %v3866_v32 = vpack.c.bf16 %v384_v31, %v383_v30  ;;  %v3874_v47 = vld [vmem:[#allocation6 + $0x10] sm:$0xff]   ;;  %v3883_v48 = vld [vmem:[#allocation6 + $0x18] ss:$0 sps:$4 sm:$0xff]   ;;  %v385_v49 = vld [vmem:[#allocation11 + $0x60] sm:$0xff]  ;;  %s3433_s16 = scalar_lea.vmem %s3432_s20, 256  ;;  %p3434_p13 = scmp.lt.s32.totalorder %s4259_s11, %s3432_s20 }
  0xc1   : > { %2481 = vmatpush3.bf16.msra.mxu0 %v3189_v2  ;;  %v386_v50 = vld [vmem:[#allocation11 + $0x68] sm:$0xff]  ;;  %v387_v52 = vld [vmem:[#allocation11 + $0x70] sm:$0xff]  ;;  %v388_v53 = vld [vmem:[#allocation11 + $0x78] sm:$0xff]  ;;  %p3430_p1 = pneg %p3429_p12  ;;  %p3435_p0 = scmp.lt.s32.totalorder %s3433_s16, %s3427_s19 }
  0xc2   : > { %2482 = vmatprep.subr.bf16.mxu0 %v3190_v3  ;;  %v3897_v51 = vpack.c.bf16 %v386_v50, %v385_v49  ;;  %v3903_v54 = vpack.c.bf16 %v388_v53, %v387_v52  ;;  %v3916_v59 = vld [vmem:[#allocation9] sm:$0x7] }
  0xc3   : > { %v536_v60 = vrot.slane %v3916_v59, %v3914_v58  ;;  %p3436_p2 = por %p3435_p0, %p3434_p13 }
  0xc5   : > { %2483 = vmatpush3.bf16.msra.mxu0 %v3190_v3  ;;  %p3437_p8 = pnand %p3436_p2, %p3430_p1 }
  0xc6   : > { %2484 = vmatprep.subr.bf16.mxu0 %v3191_v5 }
  0xc9   : > { %2485 = vmatpush3.bf16.msra.mxu0 %v3191_v5  ;;  %v2261_v5 = vunpack.c.h.bf16 %v3829_v9 }
  0xca   : > { %2486 = vmatprep.subr.bf16.mxu0 %v3192_v6 }
  0xcd   : > { %2487 = vmatpush3.bf16.msra.mxu0 %v3192_v6 }
  0xce   : > { %2488 = vmatprep.subr.bf16.mxu0 %v3193_v7 }
  0xd1   : > { %2489 = vmatpush3.bf16.msra.mxu0 %v3193_v7 }
  0xd2   : > { %2490 = vmatprep.subr.bf16.mxu0 %v3194_v8 }
  0xd5   : > { %2491 = vmatpush3.bf16.msra.mxu0 %v3194_v8 }
  0xd6   : > { %2958 = vmatprep.subr.bf16.mxu0 %v3517_v17 }
  0xd8   : > { %2493 = vmatmul.mubr.bf16.vlgmr.msra.gmra.mrb[0].mxu0 %v3829_v9  ;;  %v2264_v9 = vunpack.c.l.bf16 %v3832_v10 }
  0xd9   : > { %2496 = vmatprep.mubr.bf16.mxu0 %v3832_v10  ;;  %2960 = vmatpush3.bf16.msra.mxu0 %v3845_v16 }
  0xda   : > { %2961 = vmatprep.subr.bf16.mxu0 %v3517_v17 }
  0xdd   : > { %2963 = vmatpush3.bf16.msra.mxu0 %v3850_v20 }
  0xde   : > { %2964 = vmatprep.subr.bf16.mxu0 %v3517_v17 }
  0xe0   : > { %2497 = vmatmul.mubr.bf16.gmra.mrb[4].mxu0 %v2268_v12  ;;  %v2257_v12 = vunpack.c.h.bf16 %v3825_v4  ;;  %v2265_v4 = vunpack.c.h.bf16 %v3832_v10  ;;  %v358_v10 = vunpack.c.l.bf16 %v3837_v11 }
  0xe1   : > { %2966 = vmatpush3.bf16.msra.mxu0 %v3854_v23  ;;  %2601 = vmatprep.mubr.msk.f32.mxu0 %vm3518_vm2, %v3519_v55 }
  0xe2   : > { %2967 = vmatprep.subr.bf16.mxu0 %v3517_v17 }
  0xe5   : > { %2969 = vmatpush3.bf16.msra.mxu0 %v3858_v26 }
  0xe6   : > { %2970 = vmatprep.subr.bf16.mxu0 %v3517_v17 }
  0xe9   : > { %2972 = vmatpush3.bf16.msra.mxu0 %v3862_v29 }
  0xea   : > { %2973 = vmatprep.subr.bf16.mxu0 %v3517_v17 }
  0xed   : > { %2975 = vmatpush3.bf16.msra.mxu0 %v3866_v32 }
  0xee   : > { %2976 = vmatprep.subr.bf16.mxu0 %v3517_v17 }
  0xf1   : > { %2978 = vmatpush3.bf16.msra.mxu0 %v3897_v51 }
  0xf2   : > { %2979 = vmatprep.subr.bf16.mxu0 %v3517_v17 }
  0xf5   : > { %2981 = vmatpush3.bf16.msra.mxu0 %v3903_v54 }
 0x1ab   : > { %v2494_v33 = vpop.f32.mrb[0].mxu0 }
 0x1ac   : > { %v499_v34 = vpop.f32.mrb[1].mxu0 }
 0x1ad   : > { %v2495_v35 = vpop.f32.mrb[2].mxu0 }
 0x1ae   : > { %v530_v36 = vpack.c.bf16 %v2495_v35, %v2494_v33  ;;  %v502_v37 = vpop.f32.mrb[3].mxu0 }
 0x1af   : > { %v529_v38 = vpack.c.bf16 %v502_v37, %v499_v34 }
 0x1b1   : > { %2500 = vmatprep.subr.bf16.mxu1 %v529_v38 }
 0x1b2   : > { %2501 = vmatpush3.bf16.msra.mxu1 %v529_v38 }
 0x1b3   : > { %v2498_v39 = vpop.f32.mrb[4].mxu0  ;;  %2502 = vmatprep.subr.bf16.mxu1 %v530_v36 }
 0x1b4   : > { %v515_v40 = vpop.f32.mrb[5].mxu0  ;;  %v532_v44 = vpack.c.bf16 %v2498_v39, %v2498_v39 }
 0x1b5   : > { %v2499_v41 = vpop.f32.mrb[6].mxu0 }
 0x1b6   : > { %v518_v42 = vpop.f32.mrb[7].mxu0  ;;  %2503 = vmatpush3.bf16.msra.mxu1 %v530_v36  ;;  %v570_v45 = vsel %vm568_vm1, %v532_v44, 0 }
 0x1b7   : > { %v531_v43 = vpack.c.bf16 %v518_v42, %v515_v40 }
 0x1b9   : > { %2504 = vmatprep.subr.bf16.mxu1 %v531_v43 }
 0x1ba   : > { %2505 = vmatpush3.bf16.msra.mxu1 %v531_v43 }
 0x1bb   : > { %3078 = vmatprep.subr.msk.bf16.mxu1 %vm568_vm1, %v532_v44 }
 0x1be   : > { %2507 = vmatpush3.bf16.msra.mxu1 %v570_v45 }
 0x1bf   : > { %2934 = vmatprep.subr.bf16.mxu1 %v3517_v17 }
 0x1c1   : > { %2509 = vmatmul.mubr.msk.bf16.vlgmr.msra.gmra.mrb[0].mxu1 %vm555_vm0, %v3872_v46 }
 0x1c2   : > { %2512 = vmatprep.mubr.msk.bf16.mxu1 %vm555_vm0, %v3874_v47  ;;  %2936 = vmatpush3.bf16.msra.mxu1 %v3845_v16 }
 0x1c3   : > { %2937 = vmatprep.subr.bf16.mxu1 %v3517_v17 }
 0x1c6   : > { %2939 = vmatpush3.bf16.msra.mxu1 %v3850_v20 }
 0x1c7   : > { %2940 = vmatprep.subr.bf16.mxu1 %v3517_v17 }
 0x1c9   : > { %2513 = vmatmul.mubr.msk.bf16.gmra.mrb[4].mxu1 %vm555_vm0, %v3883_v48 }
 0x1ca   : > { %2942 = vmatpush3.bf16.msra.mxu1 %v3854_v23  ;;  %2548 = vmatprep.mubr.msk.f32.mxu1 %vm3518_vm2, %v3519_v55 }
 0x1cb   : > { %2943 = vmatprep.subr.bf16.mxu1 %v3517_v17 }
 0x1ce   : > { %2945 = vmatpush3.bf16.msra.mxu1 %v3858_v26 }
 0x1cf   : > { %2946 = vmatprep.subr.bf16.mxu1 %v3517_v17 }
 0x1d2   : > { %2948 = vmatpush3.bf16.msra.mxu1 %v3862_v29 }
 0x1d3   : > { %2949 = vmatprep.subr.bf16.mxu1 %v3517_v17 }
 0x1d6   : > { %2951 = vmatpush3.bf16.msra.mxu1 %v3866_v32 }
 0x1d7   : > { %2952 = vmatprep.subr.bf16.mxu1 %v3517_v17 }
 0x1da   : > { %2954 = vmatpush3.bf16.msra.mxu1 %v3897_v51 }
 0x1db   : > { %2955 = vmatprep.subr.bf16.mxu1 %v3517_v17 }
 0x1de   : > { %2957 = vmatpush3.bf16.msra.mxu1 %v3903_v54 }
 0x294   : > { %v2510_v61 = vpop.f32.mrb[0].mxu1 }
 0x295   : > { %v615_v63 = vadd.f32 %v2510_v61, %v536_v60  ;;  %v606_v0 = vpop.f32.mrb[1].mxu1 }
 0x296   : > { %v607_v2 = vadd.f32 %v606_v0, %v536_v60  ;;  %v2511_v3 = vpop.f32.mrb[2].mxu1 }
 0x297   : > { %v638_v6 = vmax.f32 %v615_v63, 0.0  ;;  %v618_v7 = vadd.f32 %v2511_v3, %v536_v60  ;;  %v609_v8 = vpop.f32.mrb[3].mxu1 }
 0x298   : > { %v636_v14 = vmax.f32 %v607_v2, 0.0  ;;  %v610_v15 = vadd.f32 %v609_v8, %v536_v60 }
 0x299   : > { %v645_v18 = vadd.f32 %v2260_v62, %v638_v6  ;;  %v639_v19 = vmax.f32 %v618_v7, 0.0 }
 0x29a   : > { %v643_v21 = vadd.f32 %v2256_v1, %v636_v14  ;;  %v637_v22 = vmax.f32 %v610_v15, 0.0 }
 0x29b   : > { %v646_v24 = vadd.f32 %v2261_v5, %v639_v19 }
 0x29c   : > { %v644_v25 = vadd.f32 %v2257_v12, %v637_v22  ;;  %2549 = vmatmul.mubr.f32.vlgmr.msra.gmra.mrb[8].mxu1 %v643_v21  ;;  %v2514_v27 = vpop.f32.mrb[4].mxu1 }
 0x29d   : > { %2551 = vmatprep.mubr.msk.f32.mxu1 %vm3518_vm2, %v3519_v55  ;;  %v622_v28 = vpop.f32.mrb[5].mxu1  ;;  %v631_v39 = vadd.f32 %v2514_v27, %v536_v60 }
 0x29e   : > { %v623_v30 = vadd.f32 %v622_v28, %v536_v60  ;;  %v2515_v31 = vpop.f32.mrb[6].mxu1 }
 0x29f   : > { %v625_v33 = vpop.f32.mrb[7].mxu1  ;;  %v642_v40 = vmax.f32 %v631_v39, 0.0  ;;  %v3200_v31 = vld [vmem:[#allocation8 + $0x40] sm:$0xff]  }
 0x2a0   : > { %2552 = vmatmul.mubr.f32.gmra.mrb[10].mxu1 %v644_v25  ;;  %v640_v34 = vmax.f32 %v623_v30, 0.0  ;;  %v626_v35 = vadd.f32 %v625_v33, %v536_v60  ;;  %2622 = vmatprep.subr.bf16.mxu1 %v3200_v31  ;;  %v3201_v33 = vld [vmem:[#allocation8 + $0x48] sm:$0xff]  }
 0x2a1   : > { %2554 = vmatprep.mubr.msk.f32.mxu1 %vm3518_vm2, %v3519_v55  ;;  %v649_v41 = vadd.f32 %v642_v40, %v358_v10  ;;  %2623 = vmatpush3.bf16.msra.mxu1 %v3200_v31 }
 0x2a2   : > { %v647_v36 = vadd.f32 %v2264_v9, %v640_v34  ;;  %v641_v37 = vmax.f32 %v626_v35, 0.0  ;;  %2624 = vmatprep.subr.bf16.mxu1 %v3201_v33  ;;  %v3203_v34 = vld [vmem:[#allocation8 + $0x58] sm:$0xff]   ;;  %v3204_v35 = vld [vmem:[#allocation8 + $0x60] sm:$0xff]  }
 0x2a4   : > { %v648_v38 = vadd.f32 %v2265_v4, %v641_v37  ;;  %2555 = vmatmul.mubr.f32.gmra.mrb[12].mxu1 %v645_v18  ;;  %v3202_v4 = vld [vmem:[#allocation8 + $0x50] sm:$0xff]  }
 0x2a5   : > { %2557 = vmatprep.mubr.msk.f32.mxu1 %vm3518_vm2, %v3519_v55  ;;  %2625 = vmatpush3.bf16.msra.mxu1 %v3201_v33  ;;  %v3206_v37 = vld [vmem:[#allocation8 + $0x70] sm:$0xff]  }
 0x2a6   : > { %2626 = vmatprep.subr.bf16.mxu1 %v3202_v4 }
 0x2a8   : > { %2558 = vmatmul.mubr.f32.gmra.mrb[14].mxu1 %v646_v24 }
 0x2a9   : > { %2560 = vmatprep.mubr.msk.f32.mxu1 %vm3518_vm2, %v3519_v55  ;;  %2627 = vmatpush3.bf16.msra.mxu1 %v3202_v4 }
 0x2aa   : > { %2628 = vmatprep.subr.bf16.mxu1 %v3203_v34 }
 0x2ac   : > { %2561 = vmatmul.mubr.f32.gmra.mrb[16].mxu1 %v647_v36 }
 0x2ad   : > { %2563 = vmatprep.mubr.msk.f32.mxu1 %vm3518_vm2, %v3519_v55  ;;  %2629 = vmatpush3.bf16.msra.mxu1 %v3203_v34 }
 0x2ae   : > { %2630 = vmatprep.subr.bf16.mxu1 %v3204_v35 }
 0x2b0   : > { %2564 = vmatmul.mubr.f32.gmra.mrb[18].mxu1 %v648_v38 }
 0x2b1   : > { %2566 = vmatprep.mubr.msk.f32.mxu1 %vm3518_vm2, %v3519_v55  ;;  %2631 = vmatpush3.bf16.msra.mxu1 %v3204_v35 }
 0x2b4   : > { %2567 = vmatmul.mubr.f32.gmra.mrb[20].mxu1 %v649_v41 }
 0x36f   : > { %v716_v42 = vpop.f32.mrb[8].mxu1 }
 0x370   : > { %v750_v43 = vmul.f32 0.03125, %v716_v42  ;;  %v2550_v44 = vpop.f32.mrb[9].mxu1 }
 0x372   : > { %v3939_v45 = vsub.f32 %v643_v21, %v750_v43 }
 0x373   : > { %v721_v49 = vpop.f32.mrb[10].mxu1 }
 0x374   : > { %v764_v50 = vmul.f32 %v3939_v45, %v3939_v45  ;;  %v751_v52 = vmul.f32 0.03125, %v721_v49  ;;  %v2553_v53 = vpop.f32.mrb[11].mxu1 }
 0x376   : > { %v3943_v56 = vsub.f32 %v644_v25, %v751_v52  ;;  %2602 = vmatmul.mubr.f32.vlgmr.msra.gmra.mrb[8].mxu0 %v764_v50 }
 0x377   : > { %v726_v11 = vpop.f32.mrb[12].mxu1  ;;  %2604 = vmatprep.mubr.msk.f32.mxu0 %vm3518_vm2, %v3519_v55 }
 0x378   : > { %v752_v60 = vmul.f32 0.03125, %v726_v11  ;;  %v2556_v61 = vpop.f32.mrb[13].mxu1  ;;  %v765_v62 = vmul.f32 %v3943_v56, %v3943_v56 }
 0x37a   : > { %v3949_v63 = vsub.f32 %v645_v18, %v752_v60  ;;  %2605 = vmatmul.mubr.f32.gmra.mrb[10].mxu0 %v765_v62  ;;  %v3983_v60 = vsub.s32 1, %v3911_v57 }
 0x37b   : > { %v731_v0 = vpop.f32.mrb[14].mxu1  ;;  %2607 = vmatprep.mubr.msk.f32.mxu0 %vm3518_vm2, %v3519_v55 }
 0x37c   : > { %v753_v1 = vmul.f32 0.03125, %v731_v0  ;;  %v2559_v2 = vpop.f32.mrb[15].mxu1  ;;  %v766_v3 = vmul.f32 %v3949_v63, %v3949_v63 }
 0x37e   : > { %v3955_v5 = vsub.f32 %v646_v24, %v753_v1  ;;  %2608 = vmatmul.mubr.f32.gmra.mrb[12].mxu0 %v766_v3  ;;  %v902_v3 = vrot.slane %v3916_v59, %v3983_v60 }
 0x37f   : > { %v736_v6 = vpop.f32.mrb[16].mxu1  ;;  %2610 = vmatprep.mubr.msk.f32.mxu0 %vm3518_vm2, %v3519_v55 }
 0x380   : > { %v754_v7 = vmul.f32 0.03125, %v736_v6  ;;  %v2562_v8 = vpop.f32.mrb[17].mxu1  ;;  %v767_v12 = vmul.f32 %v3955_v5, %v3955_v5  ;;  %v3988_v6 = vsub.s32 2, %v3911_v57 }
 0x382   : > { %v3961_v14 = vsub.f32 %v647_v36, %v754_v7  ;;  %2611 = vmatmul.mubr.f32.gmra.mrb[14].mxu0 %v767_v12  ;;  %v3205_v36 = vld [vmem:[#allocation8 + $0x68] sm:$0xff]  }
 0x383   : > { %v741_v15 = vpop.f32.mrb[18].mxu1  ;;  %2613 = vmatprep.mubr.msk.f32.mxu0 %vm3518_vm2, %v3519_v55  ;;  %2632 = vmatprep.subr.bf16.mxu1 %v3205_v36 }
 0x384   : > { %v755_v18 = vmul.f32 0.03125, %v741_v15  ;;  %v2565_v19 = vpop.f32.mrb[19].mxu1  ;;  %v768_v21 = vmul.f32 %v3961_v14, %v3961_v14  ;;  %2633 = vmatpush3.bf16.msra.mxu1 %v3205_v36 }
 0x385   : > { %2634 = vmatprep.subr.bf16.mxu1 %v3206_v37 }
 0x386   : > { %v3967_v22 = vsub.f32 %v648_v38, %v755_v18  ;;  %2614 = vmatmul.mubr.f32.gmra.mrb[16].mxu0 %v768_v21  ;;  %v3207_v38 = vld [vmem:[#allocation8 + $0x78] sm:$0xff]   ;;  %v913_v21 = vrot.slane %v3916_v59, %v3988_v6 }
 0x387   : > { %v746_v24 = vpop.f32.mrb[20].mxu1  ;;  %2616 = vmatprep.mubr.msk.f32.mxu0 %vm3518_vm2, %v3519_v55 }
 0x388   : > { %v756_v25 = vmul.f32 0.03125, %v746_v24  ;;  %v2568_v27 = vpop.f32.mrb[21].mxu1  ;;  %v769_v28 = vmul.f32 %v3967_v22, %v3967_v22  ;;  %2635 = vmatpush3.bf16.msra.mxu1 %v3206_v37 }
 0x389   : > { %2636 = vmatprep.subr.bf16.mxu1 %v3207_v38 }
 0x38a   : > { %v3973_v9 = vsub.f32 %v649_v41, %v756_v25  ;;  %2617 = vmatmul.mubr.f32.gmra.mrb[18].mxu0 %v769_v28 }
 0x38b   : > { %2619 = vmatprep.mubr.msk.f32.mxu0 %vm3518_vm2, %v3519_v55 }
 0x38c   : > { %v770_v30 = vmul.f32 %v3973_v9, %v3973_v9  ;;  %2637 = vmatpush3.bf16.msra.mxu1 %v3207_v38 }
 0x38d   : > { %2982 = vmatprep.subr.bf16.mxu1 %v3517_v17 }
 0x38e   : > { %2620 = vmatmul.mubr.f32.gmra.mrb[20].mxu0 %v770_v30 }
 0x38f   : > { %2654 = vmatprep.mubr.msk.bf16.mxu0 %vm555_vm0, %v3841_v13 }
 0x449   : > { %v837_v39 = vpop.f32.mrb[8].mxu0 }
 0x44a   : > { %v871_v10 = vmul.f32 0.03125, %v837_v39  ;;  %v2603_v40 = vpop.f32.mrb[9].mxu0 }
 0x44c   : > { %v878_v41 = vadd.f32 1e-05, %v871_v10 }
 0x44d   : > { %v842_v42 = vpop.f32.mrb[10].mxu0 }
 0x44e   : > { %3224 = vrsqrt.f32 %v878_v41  ;;  %v872_v43 = vmul.f32 0.03125, %v842_v42  ;;  %v2606_v44 = vpop.f32.mrb[11].mxu0 }
 0x450   : > { %v879_v49 = vadd.f32 1e-05, %v872_v43 }
 0x451   : > { %v847_v50 = vpop.f32.mrb[12].mxu0 }
 0x452   : > { %3226 = vrsqrt.f32 %v879_v49  ;;  %v873_v52 = vmul.f32 0.03125, %v847_v50  ;;  %v2609_v53 = vpop.f32.mrb[13].mxu0 }
 0x454   : > { %v880_v11 = vadd.f32 1e-05, %v873_v52 }
 0x455   : > { %v852_v61 = vpop.f32.mrb[14].mxu0 }
 0x456   : > { %3228 = vrsqrt.f32 %v880_v11  ;;  %v874_v62 = vmul.f32 0.03125, %v852_v61  ;;  %v2612_v0 = vpop.f32.mrb[15].mxu0 }
 0x458   : > { %v3225_v1 = vpop.eup %3224  ;;  %v881_v2 = vadd.f32 1e-05, %v874_v62 }
 0x459   : > { %v857_v7 = vpop.f32.mrb[16].mxu0  ;;  %v892_v8 = vmul.f32 %v3225_v1, %v3939_v45 }
 0x45a   : > { %3230 = vrsqrt.f32 %v881_v2  ;;  %v875_v12 = vmul.f32 0.03125, %v857_v7  ;;  %v2615_v15 = vpop.f32.mrb[17].mxu0 }
 0x45b   : > { %v903_v27 = vmul.f32 %v902_v3, %v892_v8 }
 0x45c   : > { %v3227_v18 = vpop.eup %3226  ;;  %v882_v19 = vadd.f32 1e-05, %v875_v12 }
 0x45d   : > { %v862_v24 = vpop.f32.mrb[18].mxu0  ;;  %v893_v25 = vmul.f32 %v3227_v18, %v3943_v56  ;;  %v3995_v34 = vadd.f32 %v913_v21, %v903_v27 }
 0x45e   : > { %3232 = vrsqrt.f32 %v882_v19  ;;  %v876_v28 = vmul.f32 0.03125, %v862_v24  ;;  %v2618_v30 = vpop.f32.mrb[19].mxu0 }
 0x45f   : > { %v904_v57 = vmul.f32 %v902_v3, %v893_v25 }
 0x460   : > { %v3229_v31 = vpop.eup %3228  ;;  %v883_v33 = vadd.f32 1e-05, %v876_v28 }
 0x461   : > { %v894_v45 = vmul.f32 %v3229_v31, %v3949_v63  ;;  %v867_v4 = vpop.f32.mrb[20].mxu0  ;;  %v3997_v35 = vadd.f32 %v913_v21, %v904_v57 }
 0x462   : > { %3234 = vrsqrt.f32 %v883_v33  ;;  %v877_v36 = vmul.f32 0.03125, %v867_v4  ;;  %v2621_v59 = vpop.f32.mrb[21].mxu0 }
 0x463   : > { %v937_v56 = vpack.c.bf16 %v3997_v35, %v3995_v34  ;;  %v905_v39 = vmul.f32 %v902_v3, %v894_v45 }
 0x464   : > { %v3231_v37 = vpop.eup %3230  ;;  %v884_v38 = vadd.f32 1e-05, %v877_v36 }
 0x465   : > { %v895_v10 = vmul.f32 %v3231_v37, %v3955_v5  ;;  %2638 = vmatprep.mubr.bf16.mxu1 %v937_v56  ;;  %v4002_v41 = vadd.f32 %v913_v21, %v905_v39 }
 0x466   : > { %3236 = vrsqrt.f32 %v884_v38 }
 0x467   : > { %v906_v40 = vmul.f32 %v902_v3, %v895_v10 }
 0x468   : > { %v3233_v63 = vpop.eup %3232 }
 0x469   : > { %v4004_v42 = vadd.f32 %v913_v21, %v906_v40  ;;  %v896_v43 = vmul.f32 %v3233_v63, %v3961_v14 }
 0x46b   : > { %v938_v44 = vpack.c.bf16 %v4004_v42, %v4002_v41  ;;  %v907_v52 = vmul.f32 %v902_v3, %v896_v43 }
 0x46c   : > { %v3235_v49 = vpop.eup %3234 }
 0x46d   : > { %2639 = vmatmul.mubr.bf16.vlgmr.msra.gmra.mrb[24].mxu1 %v938_v44  ;;  %v897_v50 = vmul.f32 %v3235_v49, %v3967_v22  ;;  %v4012_v11 = vadd.f32 %v913_v21, %v907_v52 }
 0x46e   : > { %2984 = vmatpush3.bf16.msra.mxu1 %v3845_v16 }
 0x46f   : > { %v908_v5 = vmul.f32 %v902_v3, %v897_v50  ;;  %2985 = vmatprep.subr.bf16.mxu1 %v3517_v17 }
 0x470   : > { %v3237_v53 = vpop.eup %3236 }
 0x471   : > { %v4014_v61 = vadd.f32 %v913_v21, %v908_v5  ;;  %v898_v14 = vmul.f32 %v3237_v53, %v3973_v9 }
 0x472   : > { %2987 = vmatpush3.bf16.msra.mxu1 %v3850_v20 }
 0x473   : > { %v939_v62 = vpack.c.bf16 %v4014_v61, %v4012_v11  ;;  %v909_v0 = vmul.f32 %v902_v3, %v898_v14  ;;  %2988 = vmatprep.subr.bf16.mxu1 %v3517_v17 }
 0x475   : > { %2642 = vmatprep.mubr.bf16.mxu1 %v939_v62  ;;  %v4021_v22 = vadd.f32 %v913_v21, %v909_v0 }
 0x476   : > { %2990 = vmatpush3.bf16.msra.mxu1 %v3854_v23 }
 0x477   : > { %v940_v1 = vpack.c.bf16 %v4021_v22, %v4021_v22  ;;  %2991 = vmatprep.subr.bf16.mxu1 %v3517_v17 }
 0x479   : > { %2643 = vmatmul.mubr.bf16.gmra.mrb[28].mxu1 %v940_v1 }
 0x47a   : > { %2993 = vmatpush3.bf16.msra.mxu1 %v3858_v26  ;;  %2694 = vmatprep.mubr.msk.f32.mxu1 %vm3518_vm2, %v3519_v55 }
 0x47b   : > { %2994 = vmatprep.subr.bf16.mxu1 %v3517_v17 }
 0x47e   : > { %2996 = vmatpush3.bf16.msra.mxu1 %v3862_v29 }
 0x47f   : > { %2997 = vmatprep.subr.bf16.mxu1 %v3517_v17 }
 0x482   : > { %2999 = vmatpush3.bf16.msra.mxu1 %v3866_v32 }
 0x483   : > { %3000 = vmatprep.subr.bf16.mxu1 %v3517_v17 }
 0x486   : > { %3002 = vmatpush3.bf16.msra.mxu1 %v3897_v51 }
 0x487   : > { %3003 = vmatprep.subr.bf16.mxu1 %v3517_v17 }
 0x48a   : > { %3005 = vmatpush3.bf16.msra.mxu1 %v3903_v54 }
 0x540   : > { %v2640_v9 = vpop.f32.mrb[24].mxu1 }
 0x541   : > { %v1040_v2 = vpop.f32.mrb[25].mxu1 }
 0x542   : > { %v2641_v3 = vpop.f32.mrb[26].mxu1 }
 0x543   : > { %v1071_v7 = vpack.c.bf16 %v2641_v3, %v2640_v9  ;;  %v1043_v8 = vpop.f32.mrb[27].mxu1 }
 0x544   : > { %v1070_v12 = vpack.c.bf16 %v1043_v8, %v1040_v2 }
 0x546   : > { %2646 = vmatprep.subr.bf16.mxu0 %v1070_v12 }
 0x547   : > { %2647 = vmatpush3.bf16.msra.mxu0 %v1070_v12 }
 0x548   : > { %2648 = vmatprep.subr.bf16.mxu0 %v1071_v7 }
 0x54b   : > { %2649 = vmatpush3.bf16.msra.mxu0 %v1071_v7 }
 0x54c   : > { %v2644_v15 = vpop.f32.mrb[28].mxu1 }
 0x54d   : > { %v1056_v18 = vpop.f32.mrb[29].mxu1  ;;  %v1073_v25 = vpack.c.bf16 %v2644_v15, %v2644_v15 }
 0x54e   : > { %v2645_v19 = vpop.f32.mrb[30].mxu1 }
 0x54f   : > { %v1059_v21 = vpop.f32.mrb[31].mxu1  ;;  %v1079_v27 = vsel %vm568_vm1, %v1073_v25, 0 }
 0x550   : > { %v1072_v24 = vpack.c.bf16 %v1059_v21, %v1056_v18 }
 0x552   : > { %2650 = vmatprep.subr.bf16.mxu0 %v1072_v24 }
 0x553   : > { %2651 = vmatpush3.bf16.msra.mxu0 %v1072_v24 }
 0x554   : > { %3079 = vmatprep.subr.msk.bf16.mxu0 %vm568_vm1, %v1073_v25 }
 0x557   : > { %2653 = vmatpush3.bf16.msra.mxu0 %v1079_v27 }
 0x558   : > { %3006 = vmatprep.subr.bf16.mxu0 %v3517_v17 }
 0x55a   : > { %2655 = vmatmul.mubr.msk.bf16.vlgmr.msra.gmra.mrb[24].mxu0 %vm555_vm0, %v3872_v46  ;;  %v4064_v46 = vld [vmem:[#allocation9 + $0x4] sm:$0x7] }
 0x55b   : > { %2658 = vmatprep.mubr.msk.bf16.mxu0 %vm555_vm0, %v3874_v47  ;;  %3008 = vmatpush3.bf16.msra.mxu0 %v3845_v16  ;;  %v1077_v47 = vrot.slane %v4064_v46, %v3914_v58 }
 0x55c   : > { %3009 = vmatprep.subr.bf16.mxu0 %v3517_v17 }
 0x55f   : > { %3011 = vmatpush3.bf16.msra.mxu0 %v3850_v20 }
 0x560   : > { %3012 = vmatprep.subr.bf16.mxu0 %v3517_v17 }
 0x562   : > { %2659 = vmatmul.mubr.msk.bf16.gmra.mrb[28].mxu0 %vm555_vm0, %v3883_v48 }
 0x563   : > { %3014 = vmatpush3.bf16.msra.mxu0 %v3854_v23  ;;  %2747 = vmatprep.mubr.msk.f32.mxu0 %vm3518_vm2, %v3519_v55 }
 0x564   : > { %3015 = vmatprep.subr.bf16.mxu0 %v3517_v17 }
 0x567   : > { %3017 = vmatpush3.bf16.msra.mxu0 %v3858_v26 }
 0x568   : > { %3018 = vmatprep.subr.bf16.mxu0 %v3517_v17 }
 0x56b   : > { %3020 = vmatpush3.bf16.msra.mxu0 %v3862_v29 }
 0x56c   : > { %3021 = vmatprep.subr.bf16.mxu0 %v3517_v17 }
 0x56f   : > { %3023 = vmatpush3.bf16.msra.mxu0 %v3866_v32 }
 0x570   : > { %3024 = vmatprep.subr.bf16.mxu0 %v3517_v17 }
 0x573   : > { %3026 = vmatpush3.bf16.msra.mxu0 %v3897_v51 }
 0x574   : > { %3027 = vmatprep.subr.bf16.mxu0 %v3517_v17 }
 0x577   : > { %3029 = vmatpush3.bf16.msra.mxu0 %v3903_v54 }
 0x62d   : > { %v2656_v48 = vpop.f32.mrb[24].mxu0 }
 0x62e   : > { %v1115_v28 = vpop.f32.mrb[25].mxu0  ;;  %v1124_v4 = vadd.f32 %v2656_v48, %v1077_v47 }
 0x62f   : > { %v1116_v30 = vadd.f32 %v1115_v28, %v1077_v47  ;;  %v2657_v57 = vpop.f32.mrb[26].mxu0 }
 0x630   : > { %v1118_v31 = vpop.f32.mrb[27].mxu0  ;;  %v1147_v38 = vmax.f32 %v1124_v4, 0.0  ;;  %v1127_v39 = vadd.f32 %v2657_v57, %v1077_v47 }
 0x631   : > { %v1145_v33 = vmax.f32 %v1116_v30, 0.0  ;;  %v1119_v45 = vadd.f32 %v1118_v31, %v1077_v47 }
 0x632   : > { %v1154_v43 = vadd.f32 %v1147_v38, %v4002_v41 }
 0x633   : > { %v1152_v36 = vadd.f32 %v1145_v33, %v3995_v34  ;;  %v1146_v59 = vmax.f32 %v1119_v45, 0.0  ;;  %v1148_v34 = vmax.f32 %v1127_v39, 0.0 }
 0x635   : > { %v2660_v56 = vpop.f32.mrb[28].mxu0  ;;  %2695 = vmatmul.mubr.f32.vlgmr.msra.gmra.mrb[22].mxu1 %v1152_v36  ;;  %v1153_v10 = vadd.f32 %v1146_v59, %v3997_v35  ;;  %v1155_v49 = vadd.f32 %v1148_v34, %v4004_v42  ;;  %v3211_v34 = vld [vmem:[#allocation8 + $0x98] sm:$0xff]  }
 0x636   : > { %v1131_v37 = vpop.f32.mrb[29].mxu0  ;;  %2697 = vmatprep.mubr.msk.f32.mxu1 %vm3518_vm2, %v3519_v55  ;;  %v1140_v35 = vadd.f32 %v2660_v56, %v1077_v47 }
 0x637   : > { %v2661_v40 = vpop.f32.mrb[30].mxu0  ;;  %v1132_v44 = vadd.f32 %v1131_v37, %v1077_v47 }
 0x638   : > { %v1134_v63 = vpop.f32.mrb[31].mxu0  ;;  %v1151_v41 = vmax.f32 %v1140_v35, 0.0  ;;  %v3208_v40 = vld [vmem:[#allocation8 + $0x80] sm:$0xff]  }
 0x639   : > { %2698 = vmatmul.mubr.f32.gmra.mrb[32].mxu1 %v1153_v10  ;;  %v1149_v50 = vmax.f32 %v1132_v44, 0.0  ;;  %v1135_v52 = vadd.f32 %v1134_v63, %v1077_v47  ;;  %2768 = vmatprep.subr.bf16.mxu1 %v3208_v40  ;;  %v3209_v63 = vld [vmem:[#allocation8 + $0x88] sm:$0xff]   ;;  %v3212_v44 = vld [vmem:[#allocation8 + $0xa0] sm:$0xff]  }
 0x63a   : > { %2700 = vmatprep.mubr.msk.f32.mxu1 %vm3518_vm2, %v3519_v55  ;;  %v1158_v42 = vadd.f32 %v1151_v41, %v4021_v22  ;;  %2769 = vmatpush3.bf16.msra.mxu1 %v3208_v40 }
 0x63b   : > { %v1156_v5 = vadd.f32 %v1149_v50, %v4012_v11  ;;  %v1150_v53 = vmax.f32 %v1135_v52, 0.0  ;;  %2770 = vmatprep.subr.bf16.mxu1 %v3209_v63  ;;  %v3214_v50 = vld [vmem:[#allocation8 + $0xb0] sm:$0xff]  }
 0x63d   : > { %2701 = vmatmul.mubr.f32.gmra.mrb[34].mxu1 %v1154_v43  ;;  %v1157_v14 = vadd.f32 %v1150_v53, %v4014_v61 }
 0x63e   : > { %2703 = vmatprep.mubr.msk.f32.mxu1 %vm3518_vm2, %v3519_v55  ;;  %2771 = vmatpush3.bf16.msra.mxu1 %v3209_v63 }
 0x641   : > { %2704 = vmatmul.mubr.f32.gmra.mrb[36].mxu1 %v1155_v49 }
 0x642   : > { %2706 = vmatprep.mubr.msk.f32.mxu1 %vm3518_vm2, %v3519_v55 }
 0x645   : > { %2707 = vmatmul.mubr.f32.gmra.mrb[38].mxu1 %v1156_v5 }
 0x646   : > { %2709 = vmatprep.mubr.msk.f32.mxu1 %vm3518_vm2, %v3519_v55 }
 0x649   : > { %2710 = vmatmul.mubr.f32.gmra.mrb[40].mxu1 %v1157_v14 }
 0x64a   : > { %2712 = vmatprep.mubr.msk.f32.mxu1 %vm3518_vm2, %v3519_v55 }
 0x64d   : > { %2713 = vmatmul.mubr.f32.gmra.mrb[42].mxu1 %v1158_v42 }
 0x708   : > { %v1225_v62 = vpop.f32.mrb[22].mxu1 }
 0x709   : > { %v1259_v0 = vmul.f32 0.03125, %v1225_v62  ;;  %v2696_v1 = vpop.f32.mrb[23].mxu1 }
 0x70b   : > { %v4087_v9 = vsub.f32 %v1152_v36, %v1259_v0 }
 0x70c   : > { %v1230_v11 = vpop.f32.mrb[32].mxu1 }
 0x70d   : > { %v1273_v2 = vmul.f32 %v4087_v9, %v4087_v9  ;;  %v1260_v3 = vmul.f32 0.03125, %v1230_v11  ;;  %v2699_v7 = vpop.f32.mrb[33].mxu1 }
 0x70f   : > { %v4091_v8 = vsub.f32 %v1153_v10, %v1260_v3  ;;  %2748 = vmatmul.mubr.f32.vlgmr.msra.gmra.mrb[22].mxu0 %v1273_v2 }
 0x710   : > { %v1235_v61 = vpop.f32.mrb[34].mxu1  ;;  %2750 = vmatprep.mubr.msk.f32.mxu0 %vm3518_vm2, %v3519_v55 }
 0x711   : > { %v1261_v22 = vmul.f32 0.03125, %v1235_v61  ;;  %v2702_v12 = vpop.f32.mrb[35].mxu1  ;;  %v1274_v15 = vmul.f32 %v4091_v8, %v4091_v8 }
 0x713   : > { %v4097_v18 = vsub.f32 %v1154_v43, %v1261_v22  ;;  %2751 = vmatmul.mubr.f32.gmra.mrb[32].mxu0 %v1274_v15  ;;  %v3210_v43 = vld [vmem:[#allocation8 + $0x90] sm:$0xff]   ;;  %v1411_v15 = vrot.slane %v4064_v46, %v3983_v60 }
 0x714   : > { %v1240_v19 = vpop.f32.mrb[36].mxu1  ;;  %2753 = vmatprep.mubr.msk.f32.mxu0 %vm3518_vm2, %v3519_v55  ;;  %2772 = vmatprep.subr.bf16.mxu1 %v3210_v43 }
 0x715   : > { %v1262_v21 = vmul.f32 0.03125, %v1240_v19  ;;  %v2705_v24 = vpop.f32.mrb[37].mxu1  ;;  %v1275_v25 = vmul.f32 %v4097_v18, %v4097_v18  ;;  %2773 = vmatpush3.bf16.msra.mxu1 %v3210_v43 }
 0x716   : > { %2774 = vmatprep.subr.bf16.mxu1 %v3211_v34 }
 0x717   : > { %v4103_v27 = vsub.f32 %v1155_v49, %v1262_v21  ;;  %2754 = vmatmul.mubr.f32.gmra.mrb[34].mxu0 %v1275_v25  ;;  %v3213_v49 = vld [vmem:[#allocation8 + $0xa8] sm:$0xff]  }
 0x718   : > { %v1245_v47 = vpop.f32.mrb[38].mxu1  ;;  %2756 = vmatprep.mubr.msk.f32.mxu0 %vm3518_vm2, %v3519_v55 }
 0x719   : > { %v1263_v48 = vmul.f32 0.03125, %v1245_v47  ;;  %v2708_v28 = vpop.f32.mrb[39].mxu1  ;;  %v1276_v30 = vmul.f32 %v4103_v27, %v4103_v27  ;;  %2775 = vmatpush3.bf16.msra.mxu1 %v3211_v34 }
 0x71a   : > { %2776 = vmatprep.subr.bf16.mxu1 %v3212_v44  ;;  %v1422_v28 = vrot.slane %v4064_v46, %v3988_v6 }
 0x71b   : > { %v4109_v57 = vsub.f32 %v1156_v5, %v1263_v48  ;;  %2757 = vmatmul.mubr.f32.gmra.mrb[36].mxu0 %v1276_v30 }
 0x71c   : > { %v1250_v31 = vpop.f32.mrb[40].mxu1  ;;  %2759 = vmatprep.mubr.msk.f32.mxu0 %vm3518_vm2, %v3519_v55 }
 0x71d   : > { %v1264_v33 = vmul.f32 0.03125, %v1250_v31  ;;  %v2711_v45 = vpop.f32.mrb[41].mxu1  ;;  %v1277_v4 = vmul.f32 %v4109_v57, %v4109_v57  ;;  %2777 = vmatpush3.bf16.msra.mxu1 %v3212_v44 }
 0x71e   : > { %2778 = vmatprep.subr.bf16.mxu1 %v3213_v49 }
 0x71f   : > { %v4115_v36 = vsub.f32 %v1157_v14, %v1264_v33  ;;  %2760 = vmatmul.mubr.f32.gmra.mrb[38].mxu0 %v1277_v4 }
 0x720   : > { %v1255_v59 = vpop.f32.mrb[42].mxu1  ;;  %2762 = vmatprep.mubr.msk.f32.mxu0 %vm3518_vm2, %v3519_v55 }
 0x721   : > { %v1265_v56 = vmul.f32 0.03125, %v1255_v59  ;;  %v2714_v37 = vpop.f32.mrb[43].mxu1  ;;  %v1278_v38 = vmul.f32 %v4115_v36, %v4115_v36  ;;  %2779 = vmatpush3.bf16.msra.mxu1 %v3213_v49 }
 0x722   : > { %2780 = vmatprep.subr.bf16.mxu1 %v3214_v50 }
 0x723   : > { %v4121_v39 = vsub.f32 %v1158_v42, %v1265_v56  ;;  %2763 = vmatmul.mubr.f32.gmra.mrb[40].mxu0 %v1278_v38 }
 0x724   : > { %2765 = vmatprep.mubr.msk.f32.mxu0 %vm3518_vm2, %v3519_v55 }
 0x725   : > { %v1279_v10 = vmul.f32 %v4121_v39, %v4121_v39  ;;  %2781 = vmatpush3.bf16.msra.mxu1 %v3214_v50 }
 0x727   : > { %2766 = vmatmul.mubr.f32.gmra.mrb[42].mxu0 %v1279_v10 }
 0x728   : > { %2800 = vmatprep.mubr.msk.bf16.mxu0 %vm555_vm0, %v3841_v13  ;;  %v3215_v13 = vld [vmem:[#allocation8 + $0xb8] sm:$0xff]  }
 0x729   : > { %2782 = vmatprep.subr.bf16.mxu1 %v3215_v13 }
 0x72a   : > { %2783 = vmatpush3.bf16.msra.mxu1 %v3215_v13 }
 0x72b   : > { %3030 = vmatprep.subr.bf16.mxu1 %v3517_v17 }
 0x7e2   : > { %v1346_v52 = vpop.f32.mrb[22].mxu0 }
 0x7e3   : > { %v1380_v35 = vmul.f32 0.03125, %v1346_v52  ;;  %v2749_v5 = vpop.f32.mrb[23].mxu0 }
 0x7e5   : > { %v1387_v53 = vadd.f32 1e-05, %v1380_v35 }
 0x7e6   : > { %v1351_v41 = vpop.f32.mrb[32].mxu0 }
 0x7e7   : > { %3238 = vrsqrt.f32 %v1387_v53  ;;  %v1381_v14 = vmul.f32 0.03125, %v1351_v41  ;;  %v2752_v42 = vpop.f32.mrb[33].mxu0 }
 0x7e9   : > { %v1388_v62 = vadd.f32 1e-05, %v1381_v14 }
 0x7ea   : > { %v1356_v0 = vpop.f32.mrb[34].mxu0 }
 0x7eb   : > { %3240 = vrsqrt.f32 %v1388_v62  ;;  %v1382_v1 = vmul.f32 0.03125, %v1356_v0  ;;  %v2755_v11 = vpop.f32.mrb[35].mxu0 }
 0x7ed   : > { %v1389_v2 = vadd.f32 1e-05, %v1382_v1 }
 0x7ee   : > { %v1361_v3 = vpop.f32.mrb[36].mxu0 }
 0x7ef   : > { %3242 = vrsqrt.f32 %v1389_v2  ;;  %v1383_v7 = vmul.f32 0.03125, %v1361_v3  ;;  %v2758_v61 = vpop.f32.mrb[37].mxu0 }
 0x7f1   : > { %v3239_v22 = vpop.eup %3238  ;;  %v1390_v12 = vadd.f32 1e-05, %v1383_v7 }
 0x7f2   : > { %v1366_v19 = vpop.f32.mrb[38].mxu0  ;;  %v1401_v21 = vmul.f32 %v3239_v22, %v4087_v9 }
 0x7f3   : > { %3244 = vrsqrt.f32 %v1390_v12  ;;  %v1384_v24 = vmul.f32 0.03125, %v1366_v19  ;;  %v2761_v25 = vpop.f32.mrb[39].mxu0 }
 0x7f4   : > { %v1412_v33 = vmul.f32 %v1411_v15, %v1401_v21 }
 0x7f5   : > { %v3241_v47 = vpop.eup %3240  ;;  %v1391_v48 = vadd.f32 1e-05, %v1384_v24 }
 0x7f6   : > { %v1371_v30 = vpop.f32.mrb[40].mxu0  ;;  %v1402_v31 = vmul.f32 %v3241_v47, %v4091_v8  ;;  %v4137_v10 = vadd.f32 %v1422_v28, %v1412_v33 }
 0x7f7   : > { %3246 = vrsqrt.f32 %v1391_v48  ;;  %v1385_v45 = vmul.f32 0.03125, %v1371_v30  ;;  %v2764_v4 = vpop.f32.mrb[41].mxu0  ;;  %v3255_v30 = vld [vmem:[#allocation6 + $0x10] sm:$0xff]  }
 0x7f8   : > { %v1413_v59 = vmul.f32 %v1411_v15, %v1402_v31  ;;  %v3256_v31 = vld [vmem:[#allocation6 + $0x18] ss:$0 sps:$4 sm:$0xff]  }
 0x7f9   : > { %v3243_v56 = vpop.eup %3242  ;;  %v1392_v37 = vadd.f32 1e-05, %v1385_v45 }
 0x7fa   : > { %v1403_v9 = vmul.f32 %v3243_v56, %v4097_v18  ;;  %v1376_v38 = vpop.f32.mrb[42].mxu0  ;;  %v4139_v40 = vadd.f32 %v1422_v28, %v1413_v59 }
 0x7fb   : > { %3248 = vrsqrt.f32 %v1392_v37  ;;  %v1386_v63 = vmul.f32 0.03125, %v1376_v38  ;;  %v2767_v46 = vpop.f32.mrb[43].mxu0 }
 0x7fc   : > { %v1446_v8 = vpack.c.bf16 %v4139_v40, %v4137_v10  ;;  %v1414_v44 = vmul.f32 %v1411_v15, %v1403_v9 }
 0x7fd   : > { %v3245_v43 = vpop.eup %3244  ;;  %v1393_v34 = vadd.f32 1e-05, %v1386_v63 }
 0x7fe   : > { %v1404_v49 = vmul.f32 %v3245_v43, %v4103_v27  ;;  %2784 = vmatprep.mubr.bf16.mxu1 %v1446_v8  ;;  %v4144_v13 = vadd.f32 %v1422_v28, %v1414_v44 }
 0x7ff   : > { %3250 = vrsqrt.f32 %v1393_v34 }
 0x800   : > { %v1415_v50 = vmul.f32 %v1411_v15, %v1404_v49 }
 0x801   : > { %v3247_v18 = vpop.eup %3246 }
 0x802   : > { %v4146_v52 = vadd.f32 %v1422_v28, %v1415_v50  ;;  %v1405_v35 = vmul.f32 %v3247_v18, %v4109_v57 }
 0x804   : > { %v1447_v5 = vpack.c.bf16 %v4146_v52, %v4144_v13  ;;  %v1416_v14 = vmul.f32 %v1411_v15, %v1405_v35  ;;  %v3216_v35 = vld [vmem:[#allocation12] sm:$0xff]  }
 0x805   : > { %v3249_v53 = vpop.eup %3248 }
 0x806   : > { %2785 = vmatmul.mubr.bf16.vlgmr.msra.gmra.mrb[44].mxu1 %v1447_v5  ;;  %v1406_v41 = vmul.f32 %v3249_v53, %v4115_v36  ;;  %v4154_v62 = vadd.f32 %v1422_v28, %v1416_v14  ;;  %v3217_v5 = vld [vmem:[#allocation12 + $0x8] sm:$0xff]  }
 0x807   : > { %3032 = vmatpush3.bf16.msra.mxu1 %v3845_v16 }
 0x808   : > { %v1417_v27 = vmul.f32 %v1411_v15, %v1406_v41  ;;  %3033 = vmatprep.subr.bf16.mxu1 %v3517_v17 }
 0x809   : > { %v3251_v42 = vpop.eup %3250 }
 0x80a   : > { %v4156_v0 = vadd.f32 %v1422_v28, %v1417_v27  ;;  %v1407_v57 = vmul.f32 %v3251_v42, %v4121_v39 }
 0x80b   : > { %3035 = vmatpush3.bf16.msra.mxu1 %v3850_v20 }
 0x80c   : > { %v1448_v1 = vpack.c.bf16 %v4156_v0, %v4154_v62  ;;  %v1418_v11 = vmul.f32 %v1411_v15, %v1407_v57  ;;  %3036 = vmatprep.subr.bf16.mxu1 %v3517_v17 }
 0x80e   : > { %2788 = vmatprep.mubr.bf16.mxu1 %v1448_v1  ;;  %v4163_v36 = vadd.f32 %v1422_v28, %v1418_v11  ;;  %v3254_v28 = vld [vmem:[#allocation6 + $0x8] sm:$0xff]  }
 0x80f   : > { %3038 = vmatpush3.bf16.msra.mxu1 %v3854_v23 }
 0x810   : > { %v1449_v2 = vpack.c.bf16 %v4163_v36, %v4163_v36  ;;  %3039 = vmatprep.subr.bf16.mxu1 %v3517_v17 }
 0x812   : > { %2789 = vmatmul.mubr.bf16.gmra.mrb[48].mxu1 %v1449_v2 }
 0x813   : > { %3041 = vmatpush3.bf16.msra.mxu1 %v3858_v26  ;;  %2840 = vmatprep.mubr.msk.f32.mxu1 %vm3518_vm2, %v3519_v55 }
 0x814   : > { %3042 = vmatprep.subr.bf16.mxu1 %v3517_v17 }
 0x817   : > { %3044 = vmatpush3.bf16.msra.mxu1 %v3862_v29 }
 0x818   : > { %3045 = vmatprep.subr.bf16.mxu1 %v3517_v17 }
 0x81b   : > { %3047 = vmatpush3.bf16.msra.mxu1 %v3866_v32 }
 0x81c   : > { %3048 = vmatprep.subr.bf16.mxu1 %v3517_v17 }
 0x81f   : > { %3050 = vmatpush3.bf16.msra.mxu1 %v3897_v51 }
 0x820   : > { %3051 = vmatprep.subr.bf16.mxu1 %v3517_v17 }
 0x823   : > { %3053 = vmatpush3.bf16.msra.mxu1 %v3903_v54 }
 0x824   : > { %2914 = vmatprep.subr.bf16.mxu1 %v3519_v55 }
 0x8d9   : > { %v2786_v39 = vpop.f32.mrb[44].mxu1 }
 0x8da   : > { %v1549_v3 = vpop.f32.mrb[45].mxu1 }
 0x8db   : > { %v2787_v7 = vpop.f32.mrb[46].mxu1 }
 0x8dc   : > { %v1580_v61 = vpack.c.bf16 %v2787_v7, %v2786_v39  ;;  %v1552_v22 = vpop.f32.mrb[47].mxu1 }
 0x8dd   : > { %v1579_v12 = vpack.c.bf16 %v1552_v22, %v1549_v3 }
 0x8df   : > { %2792 = vmatprep.subr.bf16.mxu0 %v1579_v12 }
 0x8e0   : > { %2793 = vmatpush3.bf16.msra.mxu0 %v1579_v12 }
 0x8e1   : > { %2794 = vmatprep.subr.bf16.mxu0 %v1580_v61 }
 0x8e4   : > { %2795 = vmatpush3.bf16.msra.mxu0 %v1580_v61 }
 0x8e5   : > { %v2790_v15 = vpop.f32.mrb[48].mxu1 }
 0x8e6   : > { %v1565_v19 = vpop.f32.mrb[49].mxu1  ;;  %v1582_v47 = vpack.c.bf16 %v2790_v15, %v2790_v15 }
 0x8e7   : > { %v2791_v21 = vpop.f32.mrb[50].mxu1 }
 0x8e8   : > { %v1568_v24 = vpop.f32.mrb[51].mxu1  ;;  %v1588_v48 = vsel %vm568_vm1, %v1582_v47, 0 }
 0x8e9   : > { %v1581_v25 = vpack.c.bf16 %v1568_v24, %v1565_v19 }
 0x8eb   : > { %2796 = vmatprep.subr.bf16.mxu0 %v1581_v25 }
 0x8ec   : > { %2797 = vmatpush3.bf16.msra.mxu0 %v1581_v25 }
 0x8ed   : > { %3080 = vmatprep.subr.msk.bf16.mxu0 %vm568_vm1, %v1582_v47 }
 0x8f0   : > { %2799 = vmatpush3.bf16.msra.mxu0 %v1588_v48 }
 0x8f1   : > { %3054 = vmatprep.subr.bf16.mxu0 %v3517_v17 }
 0x8f3   : > { %2801 = vmatmul.mubr.msk.bf16.vlgmr.msra.gmra.mrb[44].mxu0 %vm555_vm0, %v3254_v28 }
 0x8f4   : > { %2804 = vmatprep.mubr.msk.bf16.mxu0 %vm555_vm0, %v3255_v30  ;;  %3056 = vmatpush3.bf16.msra.mxu0 %v3845_v16  ;;  %v4204_v16 = vld [vmem:[#allocation9 + $0x8] sm:$0x7] }
 0x8f5   : > { %3057 = vmatprep.subr.bf16.mxu0 %v3517_v17 }
 0x8f8   : > { %3059 = vmatpush3.bf16.msra.mxu0 %v3850_v20  ;;  %v1586_v20 = vrot.slane %v4204_v16, %v3914_v58 }
 0x8f9   : > { %3060 = vmatprep.subr.bf16.mxu0 %v3517_v17 }
 0x8fb   : > { %2805 = vmatmul.mubr.msk.bf16.gmra.mrb[48].mxu0 %vm555_vm0, %v3256_v31 }
 0x8fc   : > { %3062 = vmatpush3.bf16.msra.mxu0 %v3854_v23  ;;  %2893 = vmatprep.mubr.msk.f32.mxu0 %vm3518_vm2, %v3519_v55 }
 0x8fd   : > { %3063 = vmatprep.subr.bf16.mxu0 %v3517_v17 }
 0x900   : > { %3065 = vmatpush3.bf16.msra.mxu0 %v3858_v26 }
 0x901   : > { %3066 = vmatprep.subr.bf16.mxu0 %v3517_v17 }
 0x904   : > { %3068 = vmatpush3.bf16.msra.mxu0 %v3862_v29 }
 0x905   : > { %3069 = vmatprep.subr.bf16.mxu0 %v3517_v17 }
 0x908   : > { %3071 = vmatpush3.bf16.msra.mxu0 %v3866_v32 }
 0x909   : > { %3072 = vmatprep.subr.bf16.mxu0 %v3517_v17 }
 0x90c   : > { %3074 = vmatpush3.bf16.msra.mxu0 %v3897_v51 }
 0x90d   : > { %3075 = vmatprep.subr.bf16.mxu0 %v3517_v17 }
 0x910   : > { %3077 = vmatpush3.bf16.msra.mxu0 %v3903_v54 }
 0x9c6   : > { %v2802_v23 = vpop.f32.mrb[44].mxu0 }
 0x9c7   : > { %v1624_v26 = vpop.f32.mrb[45].mxu0  ;;  %v1633_v59 = vadd.f32 %v2802_v23, %v1586_v20 }
 0x9c8   : > { %v1625_v29 = vadd.f32 %v1624_v26, %v1586_v20  ;;  %v2803_v33 = vpop.f32.mrb[46].mxu0 }
 0x9c9   : > { %v1627_v45 = vpop.f32.mrb[47].mxu0  ;;  %v1656_v54 = vmax.f32 %v1633_v59, 0.0  ;;  %v1636_v9 = vadd.f32 %v2803_v33, %v1586_v20  ;;  %v3219_v59 = vld [vmem:[#allocation12 + $0x18] sm:$0xff]  }
 0x9ca   : > { %v1654_v4 = vmax.f32 %v1625_v29, 0.0  ;;  %v1628_v32 = vadd.f32 %v1627_v45, %v1586_v20 }
 0x9cb   : > { %v1663_v46 = vadd.f32 %v1656_v54, %v4144_v13 }
 0x9cc   : > { %v1661_v56 = vadd.f32 %v1654_v4, %v4137_v10  ;;  %v1655_v51 = vmax.f32 %v1628_v32, 0.0  ;;  %v1657_v10 = vmax.f32 %v1636_v9, 0.0  ;;  %v3218_v32 = vld [vmem:[#allocation12 + $0x10] sm:$0xff]  }
 0x9ce   : > { %v2806_v37 = vpop.f32.mrb[48].mxu0  ;;  %2841 = vmatmul.mubr.f32.vlgmr.msra.gmra.mrb[52].mxu1 %v1661_v56  ;;  %v1662_v58 = vadd.f32 %v1655_v51, %v4139_v40  ;;  %v1664_v43 = vadd.f32 %v1657_v10, %v4146_v52  ;;  %v3221_v51 = vld [vmem:[#allocation12 + $0x28] sm:$0xff]  }
 0x9cf   : > { %v1640_v17 = vpop.f32.mrb[49].mxu0  ;;  %2843 = vmatprep.mubr.msk.f32.mxu1 %vm3518_vm2, %v3519_v55  ;;  %v1649_v40 = vadd.f32 %v2806_v37, %v1586_v20  ;;  %2915 = vmatpush3.bf16.msra.mxu1 %v3216_v35  ;;  %v3222_v37 = vld [vmem:[#allocation12 + $0x30] sm:$0xff]  }
 0x9d0   : > { %v2807_v38 = vpop.f32.mrb[50].mxu0  ;;  %v1641_v8 = vadd.f32 %v1640_v17, %v1586_v20  ;;  %2916 = vmatprep.subr.bf16.mxu1 %v3519_v55  ;;  %v3223_v17 = vld [vmem:[#allocation12 + $0x38] sm:$0xff]  }
 0x9d1   : > { %v1643_v63 = vpop.f32.mrb[51].mxu0  ;;  %v1660_v18 = vmax.f32 %v1649_v40, 0.0 }
 0x9d2   : > { %2844 = vmatmul.mubr.f32.gmra.mrb[54].mxu1 %v1662_v58  ;;  %v1658_v34 = vmax.f32 %v1641_v8, 0.0  ;;  %v1644_v44 = vadd.f32 %v1643_v63, %v1586_v20 }
 0x9d3   : > { %2846 = vmatprep.mubr.msk.f32.mxu1 %vm3518_vm2, %v3519_v55  ;;  %v1667_v52 = vadd.f32 %v1660_v18, %v4163_v36  ;;  %2917 = vmatpush3.bf16.msra.mxu1 %v3217_v5 }
 0x9d4   : > { %v1665_v49 = vadd.f32 %v1658_v34, %v4154_v62  ;;  %v1659_v50 = vmax.f32 %v1644_v44, 0.0  ;;  %2918 = vmatprep.subr.bf16.mxu1 %v3519_v55  ;;  %v1920_v44 = vrot.slane %v4204_v16, %v3983_v60 }
 0x9d6   : > { %2847 = vmatmul.mubr.f32.gmra.mrb[56].mxu1 %v1663_v46  ;;  %v1666_v13 = vadd.f32 %v1659_v50, %v4156_v0  ;;  %v1931_v50 = vrot.slane %v4204_v16, %v3988_v6 }
 0x9d7   : > { %2849 = vmatprep.mubr.msk.f32.mxu1 %vm3518_vm2, %v3519_v55  ;;  %2919 = vmatpush3.bf16.msra.mxu1 %v3218_v32 }
 0x9d8   : > { %2920 = vmatprep.subr.bf16.mxu1 %v3519_v55 }
 0x9da   : > { %2850 = vmatmul.mubr.f32.gmra.mrb[58].mxu1 %v1664_v43 }
 0x9db   : > { %2852 = vmatprep.mubr.msk.f32.mxu1 %vm3518_vm2, %v3519_v55  ;;  %2921 = vmatpush3.bf16.msra.mxu1 %v3219_v59 }
 0x9dc   : > { %2922 = vmatprep.subr.bf16.mxu1 %v3519_v55 }
 0x9de   : > { %2853 = vmatmul.mubr.f32.gmra.mrb[60].mxu1 %v1665_v49 }
 0x9df   : > { %2855 = vmatprep.mubr.msk.f32.mxu1 %vm3518_vm2, %v3519_v55 }
 0x9e2   : > { %2856 = vmatmul.mubr.f32.gmra.mrb[62].mxu1 %v1666_v13 }
 0x9e3   : > { %2858 = vmatprep.mubr.msk.f32.mxu1 %vm3518_vm2, %v3519_v55 }
 0x9e6   : > { %2859 = vmatmul.mubr.f32.gmra.mrb[64].mxu1 %v1667_v52 }
 0x9e7   : > { %2930 = vmatprep.mubr.msk.bf16.mxu1 %vm3518_vm2, %v3519_v55 }
 0xaa1   : > { %v1734_v53 = vpop.f32.mrb[52].mxu1 }
 0xaa2   : > { %v1768_v41 = vmul.f32 0.03125, %v1734_v53  ;;  %v2842_v14 = vpop.f32.mrb[53].mxu1 }
 0xaa4   : > { %v4231_v27 = vsub.f32 %v1661_v56, %v1768_v41  ;;  %v3220_v56 = vld [vmem:[#allocation12 + $0x20] sm:$0xff]  }
 0xaa5   : > { %v1739_v42 = vpop.f32.mrb[54].mxu1  ;;  %2923 = vmatpush3.bf16.msra.mxu1 %v3220_v56 }
 0xaa6   : > { %v1782_v62 = vmul.f32 %v4231_v27, %v4231_v27  ;;  %v1769_v0 = vmul.f32 0.03125, %v1739_v42  ;;  %v2845_v57 = vpop.f32.mrb[55].mxu1  ;;  %2924 = vmatprep.subr.bf16.mxu1 %v3519_v55 }
 0xaa8   : > { %v1776_v1 = vsub.f32 %v1662_v58, %v1769_v0  ;;  %2894 = vmatmul.mubr.f32.vlgmr.msra.gmra.mrb[52].mxu0 %v1782_v62 }
 0xaa9   : > { %v1744_v11 = vpop.f32.mrb[56].mxu1  ;;  %2896 = vmatprep.mubr.msk.f32.mxu0 %vm3518_vm2, %v3519_v55  ;;  %2925 = vmatpush3.bf16.msra.mxu1 %v3221_v51 }
 0xaaa   : > { %v1783_v36 = vmul.f32 %v1776_v1, %v1776_v1  ;;  %v1770_v2 = vmul.f32 0.03125, %v1744_v11  ;;  %v2848_v39 = vpop.f32.mrb[57].mxu1  ;;  %2926 = vmatprep.subr.bf16.mxu1 %v3519_v55 }
 0xaac   : > { %v1777_v3 = vsub.f32 %v1663_v46, %v1770_v2  ;;  %2897 = vmatmul.mubr.f32.gmra.mrb[54].mxu0 %v1783_v36 }
 0xaad   : > { %v1749_v7 = vpop.f32.mrb[58].mxu1  ;;  %2899 = vmatprep.mubr.msk.f32.mxu0 %vm3518_vm2, %v3519_v55  ;;  %2927 = vmatpush3.bf16.msra.mxu1 %v3222_v37 }
 0xaae   : > { %v1784_v61 = vmul.f32 %v1777_v3, %v1777_v3  ;;  %v1771_v22 = vmul.f32 0.03125, %v1749_v7  ;;  %v2851_v12 = vpop.f32.mrb[59].mxu1  ;;  %2928 = vmatprep.subr.bf16.mxu1 %v3519_v55 }
 0xab0   : > { %v1778_v15 = vsub.f32 %v1664_v43, %v1771_v22  ;;  %2900 = vmatmul.mubr.f32.gmra.mrb[56].mxu0 %v1784_v61 }
 0xab1   : > { %v1754_v19 = vpop.f32.mrb[60].mxu1  ;;  %2902 = vmatprep.mubr.msk.f32.mxu0 %vm3518_vm2, %v3519_v55  ;;  %2929 = vmatpush3.bf16.msra.mxu1 %v3223_v17 }
 0xab2   : > { %v1785_v21 = vmul.f32 %v1778_v15, %v1778_v15  ;;  %v1772_v24 = vmul.f32 0.03125, %v1754_v19  ;;  %v2854_v25 = vpop.f32.mrb[61].mxu1 }
 0xab4   : > { %v1779_v47 = vsub.f32 %v1665_v49, %v1772_v24  ;;  %2903 = vmatmul.mubr.f32.gmra.mrb[58].mxu0 %v1785_v21 }
 0xab5   : > { %v1759_v48 = vpop.f32.mrb[62].mxu1  ;;  %2905 = vmatprep.mubr.msk.f32.mxu0 %vm3518_vm2, %v3519_v55 }
 0xab6   : > { %v1786_v28 = vmul.f32 %v1779_v47, %v1779_v47  ;;  %v1773_v30 = vmul.f32 0.03125, %v1759_v48  ;;  %v2857_v31 = vpop.f32.mrb[63].mxu1 }
 0xab8   : > { %v1780_v20 = vsub.f32 %v1666_v13, %v1773_v30  ;;  %2906 = vmatmul.mubr.f32.gmra.mrb[60].mxu0 %v1786_v28 }
 0xab9   : > { %v1764_v23 = vpop.f32.mrb[64].mxu1  ;;  %2908 = vmatprep.mubr.msk.f32.mxu0 %vm3518_vm2, %v3519_v55 }
 0xaba   : > { %v1787_v26 = vmul.f32 %v1780_v20, %v1780_v20  ;;  %v1774_v29 = vmul.f32 0.03125, %v1764_v23  ;;  %v2860_v33 = vpop.f32.mrb[65].mxu1 }
 0xabc   : > { %v1781_v45 = vsub.f32 %v1667_v52, %v1774_v29  ;;  %2909 = vmatmul.mubr.f32.gmra.mrb[62].mxu0 %v1787_v26 }
 0xabd   : > { %2911 = vmatprep.mubr.msk.f32.mxu0 %vm3518_vm2, %v3519_v55 }
 0xabe   : > { %v1788_v4 = vmul.f32 %v1781_v45, %v1781_v45 }
 0xac0   : > { %2912 = vmatmul.mubr.f32.gmra.mrb[64].mxu0 %v1788_v4 }
 0xb7b   : > { %v1855_v54 = vpop.f32.mrb[52].mxu0 }
 0xb7c   : > { %v1889_v9 = vmul.f32 0.03125, %v1855_v54  ;;  %v2895_v58 = vpop.f32.mrb[53].mxu0 }
 0xb7e   : > { %v1896_v38 = vadd.f32 1e-05, %v1889_v9 }
 0xb7f   : > { %v1860_v63 = vpop.f32.mrb[54].mxu0 }
 0xb80   : > { %3252 = vrsqrt.f32 %v1896_v38  ;;  %v2898_v46 = vpop.f32.mrb[55].mxu0 }
 0xb83   : > { %v1865_v10 = vpop.f32.mrb[56].mxu0 }
 0xb84   : > { %v2901_v8 = vpop.f32.mrb[57].mxu0 }
 0xb87   : > { %v1870_v43 = vpop.f32.mrb[58].mxu0 }
 0xb88   : > { %v2904_v34 = vpop.f32.mrb[59].mxu0 }
 0xb8a   : > { %v3253_v40 = vpop.eup %3252 }
 0xb8b   : > { %v1910_v55 = vmul.f32 %v3253_v40, %v4231_v27  ;;  %v1875_v49 = vpop.f32.mrb[60].mxu0 }
 0xb8c   : > { %v2907_v18 = vpop.f32.mrb[61].mxu0 }
 0xb8d   : > { %v1921_v13 = vmul.f32 %v1920_v44, %v1910_v55 }
 0xb8f   : > { %v1880_v52 = vpop.f32.mrb[62].mxu0  ;;  %v1932_v35 = vadd.f32 %v1931_v50, %v1921_v13 }
 0xb90   : > { %v2910_v5 = vpop.f32.mrb[63].mxu0 }
 0xb91   : > { %v1947_v53 = vpack.c.bf16 %v1932_v35, %v1932_v35 }
 0xb93   : > { %v1885_v41 = vpop.f32.mrb[64].mxu0  ;;  %2931 = vmatmul.mubr.bf16.vlgmr.msra.gmra.mrb[68].mxu1 %v1947_v53 }
 0xb94   : > { %v2913_v14 = vpop.f32.mrb[65].mxu0 }
 0xc66   : > { %v2046_v60 = vpop.f32.mrb[68].mxu1 }
 0xc67   : > { %2052 = vst [vmem:[%s342_s25] sm:$0xff] %v2046_v60  ;;  %v2932_v6 = vpop.f32.mrb[69].mxu1 }
 0xc68   : > { %v2049_v16 = vpop.f32.mrb[70].mxu1 }
 0xc69   : > { %3440 = shalt.err (!%p3437_p8)
}
 0xc6a   : > { %s3441_s12 = scalar_lea.hbm %s4264_s10, 128  ;;  %s3445_s29 = scalar_lea.hbm %s4312_s6, 256 }
 0xc6b   : > { %p3442_p6 = scmp.ne.s32.totalorder %s4264_s10, %s3441_s12  ;;  %p3446_p3 = scmp.lt.u32.totalorder %s4264_s10, %s4312_s6 }
 0xc6c   : > { %p3447_p5 = scmp.lt.u32.totalorder %s3445_s29, %s3441_s12  ;;  %p3449_p7 = scmp.lt.u32.totalorder %s3441_s12, %s4264_s10 }
 0xc6d   : > { %p3443_p10 = pnand %p3442_p6, %p4335_p4 }
 0xc6e   : > { %p3448_p9 = por %p3447_p5, %p3446_p3 }
 0xc6f   : > { %p3444_p11 = pneg %p3443_p10 }
 0xc70   : > { %p3450_p12 = por %p3449_p7, %p3448_p9 }
 0xc72   : > { %p3451_p1 = pnand %p3450_p12, %p3444_p11 }
 0xc74   : > { %3454 = shalt.err (!%p3451_p1)
}
 0xc75   : > { %3105 = dma.vmem_to_hbm [thread:$0]  (%p4335_p4), %s4259_s11, 128, %s4264_s10, %s2054_s30   ;;  %v2933_v27 = vpop.f32.mrb[71].mxu1 }
 0xc76 PF: > { %s2079_s13 = sand.u32 1, %s3493_s21   ;;  %p4336_p13 = scmp.ne.s32.totalorder %s4324_s8, 0 }
 0xc77   : > { %p4337_p0 = scmp.ge.s32.totalorder %s3505_s24, 2  ;;  %s2080_s7 = scalar_lea.sflag [#allocation5], %s2079_s13 }
 0xc79   : > { %p3128_p2 = pnand %p4337_p0, %p4336_p13 }
 0xc7b   : > { %3488 = dma.done.wait (!%p3128_p2), %s2080_s7, 128  }
 0xc7c   : > { %3490 = vsyncadd (!%p3128_p2), %s2080_s7, 4294967168  ;;  %p22_p8 = scmp.ge.s32.totalorder %s3726_s15, 4   ;;  %s4338_s21 = smov %s3497_s22 }
 0xc7d   : > { %s4339_s22 = smov %s3501_s23  ;;  %s4340_s23 = smov %s3738_s26 }
 0xc7e   : > { %s4341_s24 = smov %s3726_s15  ;;  %24 = sbr.rel (!%p22_p8) target bundleno = 8 (0x8), region = 113 }
 0xc85   :  { %2085 = vsyncpa [#allocation4], 1 }
 0xc86   :  { %2087 = vsyncpa [#allocation4 + $0x1], 1 }
 0xc87   :  { %2088 = vsyncpa [#allocation7], 1 }
 0xc88   :  { %2089 = vsyncpa [#allocation10], 1 }
 0xc89   :  { %2090 = vsyncpa [#allocation13], 1 }
 0xc8a   :  { %2091 = vsyncpa [#allocation5], 1 }
 0xc8b   :  { %2093 = vsyncpa [#allocation5 + $0x1], 1 }

</bundles_post_ra>
